<compile_context>
chip_gen: v7x
topology: tpu7x:2x2x1
jax: 0.10.0
libtpu: 0.0.40
codegen_flags: <defaults>
</compile_context>

<pallas_src>
import functools

import jax
import jax.numpy as jnp
from jax import lax
from jax.experimental import pallas as pl
from jax.experimental.pallas import tpu as pltpu

LANE = 128   # TPU lane width: channel dims are padded to a multiple of this


def _round_up(x, m):
    return ((x + m - 1) // m) * m


# ----------------------------------------------------------------------------
# Fused kernel: 1x1 conv -> 3x3 depthwise -> 1x1 conv (+ residual)
# ----------------------------------------------------------------------------
def _identify_block_kernel(x_ref, w1_ref, b1_ref, w2_ref, b2_ref, w3_ref,
                           b3_ref, o_ref, h1_ref, *, fuse, dw_rows):
    # x_ref  : (1, H, W, Cin_p)        bf16  whole image (resident across strips)
    # w1_ref : (Cin_p, Ep)             bf16  1x1 expand conv, BN scale folded in
    # b1_ref : (1, Ep)                 f32   folded BN bias
    # w2_ref : (9, Ep)                 f32   3x3 depthwise taps (kh*kw, C), scale folded
    # b2_ref : (1, Ep)                 f32
    # w3_ref : (Ep, Cout_p)            bf16  1x1 project conv, BN scale folded in
    # b3_ref : (1, Cout_p)             f32
    # o_ref  : (1, strip_h, W, Cout_p) bf16  output strip
    # h1_ref : (H+2, W, Ep)            f32   persistent h1 scratch, 1-row zero halo
    H = h1_ref.shape[0] - 2
    W = h1_ref.shape[1]
    Ep = h1_ref.shape[2]
    strip_h = o_ref.shape[1]
    cin_p = x_ref.shape[3]
    cout_p = o_ref.shape[3]

    s = pl.program_id(1)
    r0 = pl.multiple_of(s * strip_h, strip_h)

    # ---- conv1 (once per image): full-image 1x1 conv -> h1 scratch ----------
    def prologue():
        # Only the two halo rows need zeroing (never written afterwards);
        # the interior is fully overwritten by the h1 store below.
        zrow = jnp.zeros((1, W, Ep), jnp.float32)
        h1_ref[0:1, :, :] = zrow
        h1_ref[H + 1:H + 2, :, :] = zrow
        x2d = x_ref[...].reshape(H * W, cin_p)
        h1 = jnp.dot(x2d, w1_ref[...], preferred_element_type=jnp.float32)
        h1 = jnp.clip(h1 + b1_ref[...], 0.0, 6.0)
        h1_ref[1:H + 1, :, :] = h1.reshape(H, W, Ep)

    if strip_h == H:                 # single strip per image: always run
        prologue()
    else:
        pl.when(s == 0)(prologue)

    # ---- conv2: 3x3 depthwise (VPU + XLU rolls) + folded-BN bias + ReLU6 ----
    # 'same' column padding is folded into the tap-weight maps: the left /
    # right weight maps are zeroed at the wrapped-around column, so the
    # pltpu.roll shifts need no per-tap select.
    col = lax.broadcasted_iota(jnp.int32, (1, W, 1), 1)
    keep_l = (col > 0).astype(jnp.float32)        # kills wrap into column 0
    keep_r = (col < W - 1).astype(jnp.float32)    # kills wrap into column W-1
    w2 = w2_ref[...]                              # (9, Ep)
    wl = [keep_l * w2[3 * dy + 0] for dy in range(3)]    # (1, W, Ep)
    wc = [w2[3 * dy + 1] for dy in range(3)]              # (Ep,)
    wr = [keep_r * w2[3 * dy + 2] for dy in range(3)]
    b2 = b2_ref[...]

    h2_parts = []
    for sub in range(strip_h // dw_rows):
        base = r0 + sub * dw_rows          # image row == scratch row of tap dy
        acc = None
        for dy in range(3):
            # Aligned full-width window load (no misaligned sublane slices).
            win = h1_ref[pl.ds(base + dy, dw_rows), :, :]        # (dw, W, Ep) f32
            part = (win * wc[dy]
                    + pltpu.roll(win, 1, axis=1) * wl[dy]        # col c-1 -> c
                    + pltpu.roll(win, W - 1, axis=1) * wr[dy])   # col c+1 -> c
            acc = (part + b2) if dy == 0 else acc + part         # bias folded in
        h2_parts.append(jnp.clip(acc, 0.0, 6.0).astype(jnp.bfloat16))
    h2 = h2_parts[0] if len(h2_parts) == 1 else jnp.concatenate(h2_parts, axis=0)

    # ---- conv3: 1x1 project (MXU) + folded-BN bias (+ residual) -------------
    out = jnp.dot(h2.reshape(strip_h * W, Ep), w3_ref[...],
                  preferred_element_type=jnp.float32)
    out = out + b3_ref[...]
    if fuse:
        # Residual add (in_ch == out_ch); padded channels of x are zero.
        xs = x_ref[:, pl.ds(r0, strip_h), :, :].reshape(strip_h * W, cin_p)
        out = out + xs.astype(jnp.float32)
    o_ref[...] = out.reshape(1, strip_h, W, cout_p).astype(o_ref.dtype)


# ----------------------------------------------------------------------------
# Wrapper: NCHW in / NCHW out (bf16), layout + lane padding at the boundary
# ----------------------------------------------------------------------------
def _pick_n_strips(H):
    """2 H-strips/image on v7x (>=2 grid steps per TensorCore); 1 elsewhere."""
    try:
        kind = jax.devices()[0].device_kind.lower()
    except Exception:
        kind = ""
    if "v7" in kind and H % 16 == 0:
        return 2
    return 1


def identify_block_forward(x_nchw, params, n_strips=None):
    N, c_in, H, W = x_nchw.shape
    assert c_in == params["in_ch"]
    cin_p, e_p, cout_p = params["cin_p"], params["ep"], params["cout_p"]

    if n_strips is None:
        n_strips = _pick_n_strips(H)
    assert H % n_strips == 0
    strip_h = H // n_strips
    dw_rows = 4 if strip_h % 4 == 0 else (2 if strip_h % 2 == 0 else 1)

    # NCHW -> NHWC once at the module boundary; zero-pad channels to the lane
    # width and cast the matmul operand to bf16.
    x = jnp.transpose(x_nchw, (0, 2, 3, 1))
    x = jnp.pad(x, ((0, 0), (0, 0), (0, 0), (0, cin_p - c_in)))
    x = x.astype(jnp.bfloat16)

    kernel = functools.partial(_identify_block_kernel, fuse=params["fuse"],
                               dw_rows=dw_rows)

    out = pl.pallas_call(
        kernel,
        out_shape=jax.ShapeDtypeStruct((N, H, W, cout_p), jnp.bfloat16),
        grid=(N, n_strips),
        in_specs=[
            # whole image, resident across its strips (block index constant in s)
            pl.BlockSpec((1, H, W, cin_p), lambda n, s: (n, 0, 0, 0)),
            pl.BlockSpec((cin_p, e_p), lambda n, s: (0, 0)),
            pl.BlockSpec((1, e_p), lambda n, s: (0, 0)),
            pl.BlockSpec((9, e_p), lambda n, s: (0, 0)),
            pl.BlockSpec((1, e_p), lambda n, s: (0, 0)),
            pl.BlockSpec((e_p, cout_p), lambda n, s: (0, 0)),
            pl.BlockSpec((1, cout_p), lambda n, s: (0, 0)),
        ],
        out_specs=pl.BlockSpec((1, strip_h, W, cout_p),
                               lambda n, s: (n, s, 0, 0)),
        scratch_shapes=[pltpu.VMEM((H + 2, W, e_p), jnp.float32)],
        compiler_params=pltpu.CompilerParams(
            dimension_semantics=("parallel", "arbitrary")),
    )(x, params["w1"], params["b1"], params["w2"], params["b2"],
      params["w3"], params["b3"])

    out = out[..., :params["out_ch"]]            # drop lane padding
    return jnp.transpose(out, (0, 3, 1, 2))      # NHWC -> NCHW (bf16)


# ----------------------------------------------------------------------------
# Parameter construction (deterministic, synthetic; eval-mode BN folded)
# ----------------------------------------------------------------------------
def _fold_bn(key, cout, eps=1e-5):
    k1, k2, k3, k4 = jax.random.split(key, 4)
    gamma = jax.random.uniform(k1, (cout,), jnp.float32, 0.5, 1.5)
    beta = 0.1 * jax.random.normal(k2, (cout,), jnp.float32)
    rmean = 0.1 * jax.random.normal(k3, (cout,), jnp.float32)
    rvar = jax.random.uniform(k4, (cout,), jnp.float32, 0.5, 1.5)
    scale = gamma / jnp.sqrt(rvar + eps)
    bias = beta - rmean * scale
    return scale, bias


def make_identify_block_params(key, in_ch, out_ch, expand, k=3, stride=1,
                               dilation_rate=1):
    # TODO(synk): stride=2 (+ MaxPool on the residual) and dilation_rate > 1
    # paths are not implemented; module defaults (k=3, s=1, d=1) are covered.
    assert k == 3 and stride == 1 and dilation_rate == 1
    expand_ch = int(expand * in_ch)
    cin_p = _round_up(in_ch, LANE)
    e_p = _round_up(expand_ch, LANE)
    cout_p = _round_up(out_ch, LANE)

    kw1, kw2, kw3, kb1, kb2, kb3 = jax.random.split(key, 6)

    # conv1: Conv2d(in_ch, expand_ch, 1, bias=False) + BN, ReLU6
    w1 = 0.1 * jax.random.normal(kw1, (in_ch, expand_ch), jnp.float32)
    s1, b1 = _fold_bn(kb1, expand_ch)
    w1p = jnp.zeros((cin_p, e_p), jnp.float32)
    w1p = w1p.at[:in_ch, :expand_ch].set(w1 * s1[None, :])
    b1p = jnp.zeros((1, e_p), jnp.float32).at[0, :expand_ch].set(b1)

    # conv2: depthwise Conv2d(expand_ch, expand_ch, 3, groups=expand_ch) + BN, ReLU6
    w2 = 0.1 * jax.random.normal(kw2, (3, 3, expand_ch), jnp.float32)
    s2, b2 = _fold_bn(kb2, expand_ch)
    w2p = jnp.zeros((9, e_p), jnp.float32)
    w2p = w2p.at[:, :expand_ch].set((w2 * s2[None, None, :]).reshape(9, expand_ch))
    b2p = jnp.zeros((1, e_p), jnp.float32).at[0, :expand_ch].set(b2)

    # conv3: Conv2d(expand_ch, out_ch, 1, bias=False) + BN, no activation
    w3 = 0.1 * jax.random.normal(kw3, (expand_ch, out_ch), jnp.float32)
    s3, b3 = _fold_bn(kb3, out_ch)
    w3p = jnp.zeros((e_p, cout_p), jnp.float32)
    w3p = w3p.at[:expand_ch, :out_ch].set(w3 * s3[None, :])
    b3p = jnp.zeros((1, cout_p), jnp.float32).at[0, :out_ch].set(b3)

    return {
        "in_ch": in_ch, "out_ch": out_ch, "expand_ch": expand_ch,
        "cin_p": cin_p, "ep": e_p, "cout_p": cout_p,
        "fuse": in_ch == out_ch,
        "w1": w1p.astype(jnp.bfloat16), "b1": b1p,
        "w2": w2p, "b2": b2p,
        "w3": w3p.astype(jnp.bfloat16), "b3": b3p,
    }


# ----------------------------------------------------------------------------
# Pure-JAX (XLA) reference for validation
# ----------------------------------------------------------------------------
def _reference_forward(x_nchw, params):
    cin, e, cout = params["in_ch"], params["expand_ch"], params["out_ch"]
    x = jnp.transpose(x_nchw, (0, 2, 3, 1))
    w1 = params["w1"].astype(jnp.float32)[:cin, :e]
    w2 = params["w2"][:, :e].reshape(3, 3, e)
    w3 = params["w3"].astype(jnp.float32)[:e, :cout]
    b1 = params["b1"][0, :e]
    b2 = params["b2"][0, :e]
    b3 = params["b3"][0, :cout]

    h1 = jnp.clip(jnp.einsum("nhwc,ce->nhwe", x, w1) + b1, 0.0, 6.0)
    H, W = x.shape[1], x.shape[2]
    hp = jnp.pad(h1, ((0, 0), (1, 1), (1, 1), (0, 0)))
    h2 = sum(hp[:, dy:dy + H, dx:dx + W, :] * w2[dy, dx]
             for dy in range(3) for dx in range(3))
    h2 = jnp.clip(h2 + b2, 0.0, 6.0)
    out = jnp.einsum("nhwe,eo->nhwo", h2, w3) + b3
    if params["fuse"]:
        out = out + x
    return jnp.transpose(out, (0, 3, 1, 2))


# ----------------------------------------------------------------------------
if __name__ == "__main__":
    key = jax.random.PRNGKey(0)
    kx, kp1, kp2 = jax.random.split(key, 3)

    N, C_IN, H, W = 2, 4, 16, 16
    x = jax.random.normal(kx, (N, C_IN, H, W), jnp.float32)

    # 1) residual path (need_fuse): in_ch == out_ch
    params_fuse = make_identify_block_params(kp1, C_IN, 4, 2.0)
    fwd_fuse = jax.jit(functools.partial(identify_block_forward, params=params_fuse))
    out_fuse = jax.block_until_ready(fwd_fuse(x))
    assert out_fuse.shape == (N, 4, H, W), out_fuse.shape
    assert bool(jnp.all(jnp.isfinite(out_fuse.astype(jnp.float32))))
    ref1 = _reference_forward(x, params_fuse)
    err1 = float(jnp.max(jnp.abs(out_fuse.astype(jnp.float32) - ref1)))
    assert err1 < 1e-1, f"fuse path: max |pallas - reference| = {err1}"

    # 2) plain path (no residual): in_ch != out_ch
    params_nf = make_identify_block_params(kp2, C_IN, 8, 2.0)
    fwd_nf = jax.jit(functools.partial(identify_block_forward, params=params_nf))
    out_nf = jax.block_until_ready(fwd_nf(x))
    assert out_nf.shape == (N, 8, H, W), out_nf.shape
    assert bool(jnp.all(jnp.isfinite(out_nf.astype(jnp.float32))))
    ref2 = _reference_forward(x, params_nf)
    err2 = float(jnp.max(jnp.abs(out_nf.astype(jnp.float32) - ref2)))
    assert err2 < 1e-1, f"no-fuse path: max |pallas - reference| = {err2}"

    print("KERNEL_OK")
</pallas_src>

<mosaic_0001>
module attributes {stable_mosaic.version = 11 : i64} {
  func.func @_identify_block_kernel(%arg0: i32, %arg1: i32, %arg2: memref<1x16x16x128xbf16, #tpu.memory_space<vmem>>, %arg3: memref<128x128xbf16, #tpu.memory_space<vmem>>, %arg4: memref<1x128xf32, #tpu.memory_space<vmem>>, %arg5: memref<9x128xf32, #tpu.memory_space<vmem>>, %arg6: memref<1x128xf32, #tpu.memory_space<vmem>>, %arg7: memref<128x128xbf16, #tpu.memory_space<vmem>>, %arg8: memref<1x128xf32, #tpu.memory_space<vmem>>, %arg9: memref<1x16x16x128xbf16, #tpu.memory_space<vmem>>, %arg10: memref<18x16x128xf32, #tpu.memory_space<vmem>>) attributes {dimension_semantics = [#tpu.dimension_semantics<parallel>, #tpu.dimension_semantics<arbitrary>], iteration_bounds = array<i64: 2, 1>, scalar_prefetch = 0 : i64, scratch_operands = 1 : i64, tpu.core_type = #tpu.core_type<tc>, window_params = [{transform_indices = @transform_0, window_bounds = array<i64: 1, 16, 16, 128>}, {pipeline_mode = #tpu.pipeline_mode<synchronous>, transform_indices = @transform_1, window_bounds = array<i64: 128, 128>}, {pipeline_mode = #tpu.pipeline_mode<synchronous>, transform_indices = @transform_2, window_bounds = array<i64: 1, 128>}, {pipeline_mode = #tpu.pipeline_mode<synchronous>, transform_indices = @transform_3, window_bounds = array<i64: 9, 128>}, {pipeline_mode = #tpu.pipeline_mode<synchronous>, transform_indices = @transform_4, window_bounds = array<i64: 1, 128>}, {pipeline_mode = #tpu.pipeline_mode<synchronous>, transform_indices = @transform_5, window_bounds = array<i64: 128, 128>}, {pipeline_mode = #tpu.pipeline_mode<synchronous>, transform_indices = @transform_6, window_bounds = array<i64: 1, 128>}, {transform_indices = @transform_7, window_bounds = array<i64: 1, 16, 16, 128>}]} {
    %c16_i32 = arith.constant 16 : i32
    %0 = arith.muli %arg1, %c16_i32 : i32
    %1 = tpu.assume_multiple %0, 16 : i32
    %cst = arith.constant 0.000000e+00 : f32
    %2 = vector.broadcast %cst : f32 to vector<1x16x128xf32>
    %c0 = arith.constant 0 : index
    %c0_0 = arith.constant 0 : index
    %c0_1 = arith.constant 0 : index
    %3 = vector.load %arg10[%c0, %c0_0, %c0_1] : memref<18x16x128xf32, #tpu.memory_space<vmem>>, vector<1x16x128xf32>
    tpu.vector_store %arg10[%c0, %c0_0, %c0_1], %2 {strides = array<i32>} : memref<18x16x128xf32, #tpu.memory_space<vmem>>, vector<1x16x128xf32>,
    %c17 = arith.constant 17 : index
    %c0_2 = arith.constant 0 : index
    %c0_3 = arith.constant 0 : index
    %4 = vector.load %arg10[%c17, %c0_2, %c0_3] : memref<18x16x128xf32, #tpu.memory_space<vmem>>, vector<1x16x128xf32>
    tpu.vector_store %arg10[%c17, %c0_2, %c0_3], %2 {strides = array<i32>} : memref<18x16x128xf32, #tpu.memory_space<vmem>>, vector<1x16x128xf32>,
    %c0_4 = arith.constant 0 : index
    %c0_5 = arith.constant 0 : index
    %c0_6 = arith.constant 0 : index
    %c0_7 = arith.constant 0 : index
    %5 = vector.load %arg2[%c0_4, %c0_5, %c0_6, %c0_7] : memref<1x16x16x128xbf16, #tpu.memory_space<vmem>>, vector<1x16x16x128xbf16>
    %6 = vector.shape_cast %5 : vector<1x16x16x128xbf16> to vector<256x128xbf16>
    %c0_8 = arith.constant 0 : index
    %c0_9 = arith.constant 0 : index
    %7 = vector.load %arg3[%c0_8, %c0_9] : memref<128x128xbf16, #tpu.memory_space<vmem>>, vector<128x128xbf16>
    %cst_10 = arith.constant dense<0.000000e+00> : vector<256x128xf32>
    %8 = tpu.matmul %6, %7, %cst_10 {dimension_numbers = #tpu.dot_dimension_numbers<[1], [0], [0], [1], [0, 0, 1, 1], [], []>} : vector<256x128xbf16>, vector<128x128xbf16>, vector<256x128xf32> -> vector<256x128xf32>
    %c0_11 = arith.constant 0 : index
    %c0_12 = arith.constant 0 : index
    %9 = vector.load %arg4[%c0_11, %c0_12] : memref<1x128xf32, #tpu.memory_space<vmem>>, vector<1x128xf32>
    %10 = vector.broadcast %9 : vector<1x128xf32> to vector<256x128xf32>
    %11 = arith.addf %8, %10 : vector<256x128xf32>
    %cst_13 = arith.constant 0.000000e+00 : f32
    %cst_14 = arith.constant 6.000000e+00 : f32
    %12 = vector.broadcast %cst_13 : f32 to vector<256x128xf32>
    %13 = arith.maximumf %12, %11 : vector<256x128xf32>
    %14 = vector.broadcast %cst_14 : f32 to vector<256x128xf32>
    %15 = arith.minimumf %14, %13 : vector<256x128xf32>
    %16 = vector.shape_cast %15 : vector<256x128xf32> to vector<16x16x128xf32>
    %c1 = arith.constant 1 : index
    %c0_15 = arith.constant 0 : index
    %c0_16 = arith.constant 0 : index
    %17 = vector.load %arg10[%c1, %c0_15, %c0_16] : memref<18x16x128xf32, #tpu.memory_space<vmem>>, vector<16x16x128xf32>
    tpu.vector_store %arg10[%c1, %c0_15, %c0_16], %16 {strides = array<i32>} : memref<18x16x128xf32, #tpu.memory_space<vmem>>, vector<16x16x128xf32>,
    %18 = tpu.iota {dimensions = array<i32: 1>} : vector<1x16x1xi32>
    %c0_i32 = arith.constant 0 : i32
    %19 = vector.broadcast %c0_i32 : i32 to vector<1x16x1xi32>
    %20 = arith.cmpi sgt, %18, %19 : vector<1x16x1xi32>
    %21 = arith.extui %20 : vector<1x16x1xi1> to vector<1x16x1xi32>
    %22 = arith.sitofp %21 : vector<1x16x1xi32> to vector<1x16x1xf32>
    %c15_i32 = arith.constant 15 : i32
    %23 = vector.broadcast %c15_i32 : i32 to vector<1x16x1xi32>
    %24 = arith.cmpi slt, %18, %23 : vector<1x16x1xi32>
    %25 = arith.extui %24 : vector<1x16x1xi1> to vector<1x16x1xi32>
    %26 = arith.sitofp %25 : vector<1x16x1xi32> to vector<1x16x1xf32>
    %c0_17 = arith.constant 0 : index
    %c0_18 = arith.constant 0 : index
    %27 = vector.load %arg5[%c0_17, %c0_18] : memref<9x128xf32, #tpu.memory_space<vmem>>, vector<9x128xf32>
    %28 = vector.extract_strided_slice %27 {offsets = [0, 0], sizes = [1, 128], strides = [1, 1]} : vector<9x128xf32> to vector<1x128xf32>
    %29 = vector.shape_cast %28 : vector<1x128xf32> to vector<128xf32>
    %30 = vector.shape_cast %29 : vector<128xf32> to vector<1x1x128xf32>
    %31 = vector.broadcast %22 : vector<1x16x1xf32> to vector<1x16x128xf32>
    %32 = vector.broadcast %30 : vector<1x1x128xf32> to vector<1x16x128xf32>
    %33 = arith.mulf %31, %32 : vector<1x16x128xf32>
    %34 = vector.extract_strided_slice %27 {offsets = [3, 0], sizes = [1, 128], strides = [1, 1]} : vector<9x128xf32> to vector<1x128xf32>
    %35 = vector.shape_cast %34 : vector<1x128xf32> to vector<128xf32>
    %36 = vector.shape_cast %35 : vector<128xf32> to vector<1x1x128xf32>
    %37 = vector.broadcast %22 : vector<1x16x1xf32> to vector<1x16x128xf32>
    %38 = vector.broadcast %36 : vector<1x1x128xf32> to vector<1x16x128xf32>
    %39 = arith.mulf %37, %38 : vector<1x16x128xf32>
    %40 = vector.extract_strided_slice %27 {offsets = [6, 0], sizes = [1, 128], strides = [1, 1]} : vector<9x128xf32> to vector<1x128xf32>
    %41 = vector.shape_cast %40 : vector<1x128xf32> to vector<128xf32>
    %42 = vector.shape_cast %41 : vector<128xf32> to vector<1x1x128xf32>
    %43 = vector.broadcast %22 : vector<1x16x1xf32> to vector<1x16x128xf32>
    %44 = vector.broadcast %42 : vector<1x1x128xf32> to vector<1x16x128xf32>
    %45 = arith.mulf %43, %44 : vector<1x16x128xf32>
    %46 = vector.extract_strided_slice %27 {offsets = [1, 0], sizes = [1, 128], strides = [1, 1]} : vector<9x128xf32> to vector<1x128xf32>
    %47 = vector.shape_cast %46 : vector<1x128xf32> to vector<128xf32>
    %48 = vector.extract_strided_slice %27 {offsets = [4, 0], sizes = [1, 128], strides = [1, 1]} : vector<9x128xf32> to vector<1x128xf32>
    %49 = vector.shape_cast %48 : vector<1x128xf32> to vector<128xf32>
    %50 = vector.extract_strided_slice %27 {offsets = [7, 0], sizes = [1, 128], strides = [1, 1]} : vector<9x128xf32> to vector<1x128xf32>
    %51 = vector.shape_cast %50 : vector<1x128xf32> to vector<128xf32>
    %52 = vector.extract_strided_slice %27 {offsets = [2, 0], sizes = [1, 128], strides = [1, 1]} : vector<9x128xf32> to vector<1x128xf32>
    %53 = vector.shape_cast %52 : vector<1x128xf32> to vector<128xf32>
    %54 = vector.shape_cast %53 : vector<128xf32> to vector<1x1x128xf32>
    %55 = vector.broadcast %26 : vector<1x16x1xf32> to vector<1x16x128xf32>
    %56 = vector.broadcast %54 : vector<1x1x128xf32> to vector<1x16x128xf32>
    %57 = arith.mulf %55, %56 : vector<1x16x128xf32>
    %58 = vector.extract_strided_slice %27 {offsets = [5, 0], sizes = [1, 128], strides = [1, 1]} : vector<9x128xf32> to vector<1x128xf32>
    %59 = vector.shape_cast %58 : vector<1x128xf32> to vector<128xf32>
    %60 = vector.shape_cast %59 : vector<128xf32> to vector<1x1x128xf32>
    %61 = vector.broadcast %26 : vector<1x16x1xf32> to vector<1x16x128xf32>
    %62 = vector.broadcast %60 : vector<1x1x128xf32> to vector<1x16x128xf32>
    %63 = arith.mulf %61, %62 : vector<1x16x128xf32>
    %64 = vector.extract_strided_slice %27 {offsets = [8, 0], sizes = [1, 128], strides = [1, 1]} : vector<9x128xf32> to vector<1x128xf32>
    %65 = vector.shape_cast %64 : vector<1x128xf32> to vector<128xf32>
    %66 = vector.shape_cast %65 : vector<128xf32> to vector<1x1x128xf32>
    %67 = vector.broadcast %26 : vector<1x16x1xf32> to vector<1x16x128xf32>
    %68 = vector.broadcast %66 : vector<1x1x128xf32> to vector<1x16x128xf32>
    %69 = arith.mulf %67, %68 : vector<1x16x128xf32>
    %c0_19 = arith.constant 0 : index
    %c0_20 = arith.constant 0 : index
    %70 = vector.load %arg6[%c0_19, %c0_20] : memref<1x128xf32, #tpu.memory_space<vmem>>, vector<1x128xf32>
    %c0_i32_21 = arith.constant 0 : i32
    %71 = arith.addi %1, %c0_i32_21 : i32
    %c0_i32_22 = arith.constant 0 : i32
    %72 = arith.addi %71, %c0_i32_22 : i32
    %73 = arith.index_cast %72 : i32 to index
    %c0_23 = arith.constant 0 : index
    %c0_24 = arith.constant 0 : index
    %74 = vector.load %arg10[%73, %c0_23, %c0_24] : memref<18x16x128xf32, #tpu.memory_space<vmem>>, vector<4x16x128xf32>
    %75 = vector.shape_cast %47 : vector<128xf32> to vector<1x1x128xf32>
    %76 = vector.broadcast %75 : vector<1x1x128xf32> to vector<4x16x128xf32>
    %77 = arith.mulf %74, %76 : vector<4x16x128xf32>
    %c1_i32 = arith.constant 1 : i32
    %78 = tpu.dynamic_rotate %74 by %c1_i32 dim 1 : vector<4x16x128xf32>, i32 -> vector<4x16x128xf32>
    %79 = vector.broadcast %33 : vector<1x16x128xf32> to vector<4x16x128xf32>
    %80 = arith.mulf %78, %79 : vector<4x16x128xf32>
    %81 = arith.addf %77, %80 : vector<4x16x128xf32>
    %c15_i32_25 = arith.constant 15 : i32
    %82 = tpu.dynamic_rotate %74 by %c15_i32_25 dim 1 : vector<4x16x128xf32>, i32 -> vector<4x16x128xf32>
    %83 = vector.broadcast %57 : vector<1x16x128xf32> to vector<4x16x128xf32>
    %84 = arith.mulf %82, %83 : vector<4x16x128xf32>
    %85 = arith.addf %81, %84 : vector<4x16x128xf32>
    %86 = vector.shape_cast %70 : vector<1x128xf32> to vector<1x1x128xf32>
    %87 = vector.broadcast %86 : vector<1x1x128xf32> to vector<4x16x128xf32>
    %88 = arith.addf %85, %87 : vector<4x16x128xf32>
    %c1_i32_26 = arith.constant 1 : i32
    %89 = arith.addi %71, %c1_i32_26 : i32
    %90 = arith.index_cast %89 : i32 to index
    %c0_27 = arith.constant 0 : index
    %c0_28 = arith.constant 0 : index
    %91 = vector.load %arg10[%90, %c0_27, %c0_28] : memref<18x16x128xf32, #tpu.memory_space<vmem>>, vector<4x16x128xf32>
    %92 = vector.shape_cast %49 : vector<128xf32> to vector<1x1x128xf32>
    %93 = vector.broadcast %92 : vector<1x1x128xf32> to vector<4x16x128xf32>
    %94 = arith.mulf %91, %93 : vector<4x16x128xf32>
    %c1_i32_29 = arith.constant 1 : i32
    %95 = tpu.dynamic_rotate %91 by %c1_i32_29 dim 1 : vector<4x16x128xf32>, i32 -> vector<4x16x128xf32>
    %96 = vector.broadcast %39 : vector<1x16x128xf32> to vector<4x16x128xf32>
    %97 = arith.mulf %95, %96 : vector<4x16x128xf32>
    %98 = arith.addf %94, %97 : vector<4x16x128xf32>
    %c15_i32_30 = arith.constant 15 : i32
    %99 = tpu.dynamic_rotate %91 by %c15_i32_30 dim 1 : vector<4x16x128xf32>, i32 -> vector<4x16x128xf32>
    %100 = vector.broadcast %63 : vector<1x16x128xf32> to vector<4x16x128xf32>
    %101 = arith.mulf %99, %100 : vector<4x16x128xf32>
    %102 = arith.addf %98, %101 : vector<4x16x128xf32>
    %103 = arith.addf %88, %102 : vector<4x16x128xf32>
    %c2_i32 = arith.constant 2 : i32
    %104 = arith.addi %71, %c2_i32 : i32
    %105 = arith.index_cast %104 : i32 to index
    %c0_31 = arith.constant 0 : index
    %c0_32 = arith.constant 0 : index
    %106 = vector.load %arg10[%105, %c0_31, %c0_32] : memref<18x16x128xf32, #tpu.memory_space<vmem>>, vector<4x16x128xf32>
    %107 = vector.shape_cast %51 : vector<128xf32> to vector<1x1x128xf32>
    %108 = vector.broadcast %107 : vector<1x1x128xf32> to vector<4x16x128xf32>
    %109 = arith.mulf %106, %108 : vector<4x16x128xf32>
    %c1_i32_33 = arith.constant 1 : i32
    %110 = tpu.dynamic_rotate %106 by %c1_i32_33 dim 1 : vector<4x16x128xf32>, i32 -> vector<4x16x128xf32>
    %111 = vector.broadcast %45 : vector<1x16x128xf32> to vector<4x16x128xf32>
    %112 = arith.mulf %110, %111 : vector<4x16x128xf32>
    %113 = arith.addf %109, %112 : vector<4x16x128xf32>
    %c15_i32_34 = arith.constant 15 : i32
    %114 = tpu.dynamic_rotate %106 by %c15_i32_34 dim 1 : vector<4x16x128xf32>, i32 -> vector<4x16x128xf32>
    %115 = vector.broadcast %69 : vector<1x16x128xf32> to vector<4x16x128xf32>
    %116 = arith.mulf %114, %115 : vector<4x16x128xf32>
    %117 = arith.addf %113, %116 : vector<4x16x128xf32>
    %118 = arith.addf %103, %117 : vector<4x16x128xf32>
    %cst_35 = arith.constant 0.000000e+00 : f32
    %cst_36 = arith.constant 6.000000e+00 : f32
    %119 = vector.broadcast %cst_35 : f32 to vector<4x16x128xf32>
    %120 = arith.maximumf %119, %118 : vector<4x16x128xf32>
    %121 = vector.broadcast %cst_36 : f32 to vector<4x16x128xf32>
    %122 = arith.minimumf %121, %120 : vector<4x16x128xf32>
    %123 = arith.truncf %122 : vector<4x16x128xf32> to vector<4x16x128xbf16>
    %c4_i32 = arith.constant 4 : i32
    %124 = arith.addi %1, %c4_i32 : i32
    %c0_i32_37 = arith.constant 0 : i32
    %125 = arith.addi %124, %c0_i32_37 : i32
    %126 = arith.index_cast %125 : i32 to index
    %c0_38 = arith.constant 0 : index
    %c0_39 = arith.constant 0 : index
    %127 = vector.load %arg10[%126, %c0_38, %c0_39] : memref<18x16x128xf32, #tpu.memory_space<vmem>>, vector<4x16x128xf32>
    %128 = vector.shape_cast %47 : vector<128xf32> to vector<1x1x128xf32>
    %129 = vector.broadcast %128 : vector<1x1x128xf32> to vector<4x16x128xf32>
    %130 = arith.mulf %127, %129 : vector<4x16x128xf32>
    %c1_i32_40 = arith.constant 1 : i32
    %131 = tpu.dynamic_rotate %127 by %c1_i32_40 dim 1 : vector<4x16x128xf32>, i32 -> vector<4x16x128xf32>
    %132 = vector.broadcast %33 : vector<1x16x128xf32> to vector<4x16x128xf32>
    %133 = arith.mulf %131, %132 : vector<4x16x128xf32>
    %134 = arith.addf %130, %133 : vector<4x16x128xf32>
    %c15_i32_41 = arith.constant 15 : i32
    %135 = tpu.dynamic_rotate %127 by %c15_i32_41 dim 1 : vector<4x16x128xf32>, i32 -> vector<4x16x128xf32>
    %136 = vector.broadcast %57 : vector<1x16x128xf32> to vector<4x16x128xf32>
    %137 = arith.mulf %135, %136 : vector<4x16x128xf32>
    %138 = arith.addf %134, %137 : vector<4x16x128xf32>
    %139 = vector.shape_cast %70 : vector<1x128xf32> to vector<1x1x128xf32>
    %140 = vector.broadcast %139 : vector<1x1x128xf32> to vector<4x16x128xf32>
    %141 = arith.addf %138, %140 : vector<4x16x128xf32>
    %c1_i32_42 = arith.constant 1 : i32
    %142 = arith.addi %124, %c1_i32_42 : i32
    %143 = arith.index_cast %142 : i32 to index
    %c0_43 = arith.constant 0 : index
    %c0_44 = arith.constant 0 : index
    %144 = vector.load %arg10[%143, %c0_43, %c0_44] : memref<18x16x128xf32, #tpu.memory_space<vmem>>, vector<4x16x128xf32>
    %145 = vector.shape_cast %49 : vector<128xf32> to vector<1x1x128xf32>
    %146 = vector.broadcast %145 : vector<1x1x128xf32> to vector<4x16x128xf32>
    %147 = arith.mulf %144, %146 : vector<4x16x128xf32>
    %c1_i32_45 = arith.constant 1 : i32
    %148 = tpu.dynamic_rotate %144 by %c1_i32_45 dim 1 : vector<4x16x128xf32>, i32 -> vector<4x16x128xf32>
    %149 = vector.broadcast %39 : vector<1x16x128xf32> to vector<4x16x128xf32>
    %150 = arith.mulf %148, %149 : vector<4x16x128xf32>
    %151 = arith.addf %147, %150 : vector<4x16x128xf32>
    %c15_i32_46 = arith.constant 15 : i32
    %152 = tpu.dynamic_rotate %144 by %c15_i32_46 dim 1 : vector<4x16x128xf32>, i32 -> vector<4x16x128xf32>
    %153 = vector.broadcast %63 : vector<1x16x128xf32> to vector<4x16x128xf32>
    %154 = arith.mulf %152, %153 : vector<4x16x128xf32>
    %155 = arith.addf %151, %154 : vector<4x16x128xf32>
    %156 = arith.addf %141, %155 : vector<4x16x128xf32>
    %c2_i32_47 = arith.constant 2 : i32
    %157 = arith.addi %124, %c2_i32_47 : i32
    %158 = arith.index_cast %157 : i32 to index
    %c0_48 = arith.constant 0 : index
    %c0_49 = arith.constant 0 : index
    %159 = vector.load %arg10[%158, %c0_48, %c0_49] : memref<18x16x128xf32, #tpu.memory_space<vmem>>, vector<4x16x128xf32>
    %160 = vector.shape_cast %51 : vector<128xf32> to vector<1x1x128xf32>
    %161 = vector.broadcast %160 : vector<1x1x128xf32> to vector<4x16x128xf32>
    %162 = arith.mulf %159, %161 : vector<4x16x128xf32>
    %c1_i32_50 = arith.constant 1 : i32
    %163 = tpu.dynamic_rotate %159 by %c1_i32_50 dim 1 : vector<4x16x128xf32>, i32 -> vector<4x16x128xf32>
    %164 = vector.broadcast %45 : vector<1x16x128xf32> to vector<4x16x128xf32>
    %165 = arith.mulf %163, %164 : vector<4x16x128xf32>
    %166 = arith.addf %162, %165 : vector<4x16x128xf32>
    %c15_i32_51 = arith.constant 15 : i32
    %167 = tpu.dynamic_rotate %159 by %c15_i32_51 dim 1 : vector<4x16x128xf32>, i32 -> vector<4x16x128xf32>
    %168 = vector.broadcast %69 : vector<1x16x128xf32> to vector<4x16x128xf32>
    %169 = arith.mulf %167, %168 : vector<4x16x128xf32>
    %170 = arith.addf %166, %169 : vector<4x16x128xf32>
    %171 = arith.addf %156, %170 : vector<4x16x128xf32>
    %cst_52 = arith.constant 0.000000e+00 : f32
    %cst_53 = arith.constant 6.000000e+00 : f32
    %172 = vector.broadcast %cst_52 : f32 to vector<4x16x128xf32>
    %173 = arith.maximumf %172, %171 : vector<4x16x128xf32>
    %174 = vector.broadcast %cst_53 : f32 to vector<4x16x128xf32>
    %175 = arith.minimumf %174, %173 : vector<4x16x128xf32>
    %176 = arith.truncf %175 : vector<4x16x128xf32> to vector<4x16x128xbf16>
    %c8_i32 = arith.constant 8 : i32
    %177 = arith.addi %1, %c8_i32 : i32
    %c0_i32_54 = arith.constant 0 : i32
    %178 = arith.addi %177, %c0_i32_54 : i32
    %179 = arith.index_cast %178 : i32 to index
    %c0_55 = arith.constant 0 : index
    %c0_56 = arith.constant 0 : index
    %180 = vector.load %arg10[%179, %c0_55, %c0_56] : memref<18x16x128xf32, #tpu.memory_space<vmem>>, vector<4x16x128xf32>
    %181 = vector.shape_cast %47 : vector<128xf32> to vector<1x1x128xf32>
    %182 = vector.broadcast %181 : vector<1x1x128xf32> to vector<4x16x128xf32>
    %183 = arith.mulf %180, %182 : vector<4x16x128xf32>
    %c1_i32_57 = arith.constant 1 : i32
    %184 = tpu.dynamic_rotate %180 by %c1_i32_57 dim 1 : vector<4x16x128xf32>, i32 -> vector<4x16x128xf32>
    %185 = vector.broadcast %33 : vector<1x16x128xf32> to vector<4x16x128xf32>
    %186 = arith.mulf %184, %185 : vector<4x16x128xf32>
    %187 = arith.addf %183, %186 : vector<4x16x128xf32>
    %c15_i32_58 = arith.constant 15 : i32
    %188 = tpu.dynamic_rotate %180 by %c15_i32_58 dim 1 : vector<4x16x128xf32>, i32 -> vector<4x16x128xf32>
    %189 = vector.broadcast %57 : vector<1x16x128xf32> to vector<4x16x128xf32>
    %190 = arith.mulf %188, %189 : vector<4x16x128xf32>
    %191 = arith.addf %187, %190 : vector<4x16x128xf32>
    %192 = vector.shape_cast %70 : vector<1x128xf32> to vector<1x1x128xf32>
    %193 = vector.broadcast %192 : vector<1x1x128xf32> to vector<4x16x128xf32>
    %194 = arith.addf %191, %193 : vector<4x16x128xf32>
    %c1_i32_59 = arith.constant 1 : i32
    %195 = arith.addi %177, %c1_i32_59 : i32
    %196 = arith.index_cast %195 : i32 to index
    %c0_60 = arith.constant 0 : index
    %c0_61 = arith.constant 0 : index
    %197 = vector.load %arg10[%196, %c0_60, %c0_61] : memref<18x16x128xf32, #tpu.memory_space<vmem>>, vector<4x16x128xf32>
    %198 = vector.shape_cast %49 : vector<128xf32> to vector<1x1x128xf32>
    %199 = vector.broadcast %198 : vector<1x1x128xf32> to vector<4x16x128xf32>
    %200 = arith.mulf %197, %199 : vector<4x16x128xf32>
    %c1_i32_62 = arith.constant 1 : i32
    %201 = tpu.dynamic_rotate %197 by %c1_i32_62 dim 1 : vector<4x16x128xf32>, i32 -> vector<4x16x128xf32>
    %202 = vector.broadcast %39 : vector<1x16x128xf32> to vector<4x16x128xf32>
    %203 = arith.mulf %201, %202 : vector<4x16x128xf32>
    %204 = arith.addf %200, %203 : vector<4x16x128xf32>
    %c15_i32_63 = arith.constant 15 : i32
    %205 = tpu.dynamic_rotate %197 by %c15_i32_63 dim 1 : vector<4x16x128xf32>, i32 -> vector<4x16x128xf32>
    %206 = vector.broadcast %63 : vector<1x16x128xf32> to vector<4x16x128xf32>
    %207 = arith.mulf %205, %206 : vector<4x16x128xf32>
    %208 = arith.addf %204, %207 : vector<4x16x128xf32>
    %209 = arith.addf %194, %208 : vector<4x16x128xf32>
    %c2_i32_64 = arith.constant 2 : i32
    %210 = arith.addi %177, %c2_i32_64 : i32
    %211 = arith.index_cast %210 : i32 to index
    %c0_65 = arith.constant 0 : index
    %c0_66 = arith.constant 0 : index
    %212 = vector.load %arg10[%211, %c0_65, %c0_66] : memref<18x16x128xf32, #tpu.memory_space<vmem>>, vector<4x16x128xf32>
    %213 = vector.shape_cast %51 : vector<128xf32> to vector<1x1x128xf32>
    %214 = vector.broadcast %213 : vector<1x1x128xf32> to vector<4x16x128xf32>
    %215 = arith.mulf %212, %214 : vector<4x16x128xf32>
    %c1_i32_67 = arith.constant 1 : i32
    %216 = tpu.dynamic_rotate %212 by %c1_i32_67 dim 1 : vector<4x16x128xf32>, i32 -> vector<4x16x128xf32>
    %217 = vector.broadcast %45 : vector<1x16x128xf32> to vector<4x16x128xf32>
    %218 = arith.mulf %216, %217 : vector<4x16x128xf32>
    %219 = arith.addf %215, %218 : vector<4x16x128xf32>
    %c15_i32_68 = arith.constant 15 : i32
    %220 = tpu.dynamic_rotate %212 by %c15_i32_68 dim 1 : vector<4x16x128xf32>, i32 -> vector<4x16x128xf32>
    %221 = vector.broadcast %69 : vector<1x16x128xf32> to vector<4x16x128xf32>
    %222 = arith.mulf %220, %221 : vector<4x16x128xf32>
    %223 = arith.addf %219, %222 : vector<4x16x128xf32>
    %224 = arith.addf %209, %223 : vector<4x16x128xf32>
    %cst_69 = arith.constant 0.000000e+00 : f32
    %cst_70 = arith.constant 6.000000e+00 : f32
    %225 = vector.broadcast %cst_69 : f32 to vector<4x16x128xf32>
    %226 = arith.maximumf %225, %224 : vector<4x16x128xf32>
    %227 = vector.broadcast %cst_70 : f32 to vector<4x16x128xf32>
    %228 = arith.minimumf %227, %226 : vector<4x16x128xf32>
    %229 = arith.truncf %228 : vector<4x16x128xf32> to vector<4x16x128xbf16>
    %c12_i32 = arith.constant 12 : i32
    %230 = arith.addi %1, %c12_i32 : i32
    %c0_i32_71 = arith.constant 0 : i32
    %231 = arith.addi %230, %c0_i32_71 : i32
    %232 = arith.index_cast %231 : i32 to index
    %c0_72 = arith.constant 0 : index
    %c0_73 = arith.constant 0 : index
    %233 = vector.load %arg10[%232, %c0_72, %c0_73] : memref<18x16x128xf32, #tpu.memory_space<vmem>>, vector<4x16x128xf32>
    %234 = vector.shape_cast %47 : vector<128xf32> to vector<1x1x128xf32>
    %235 = vector.broadcast %234 : vector<1x1x128xf32> to vector<4x16x128xf32>
    %236 = arith.mulf %233, %235 : vector<4x16x128xf32>
    %c1_i32_74 = arith.constant 1 : i32
    %237 = tpu.dynamic_rotate %233 by %c1_i32_74 dim 1 : vector<4x16x128xf32>, i32 -> vector<4x16x128xf32>
    %238 = vector.broadcast %33 : vector<1x16x128xf32> to vector<4x16x128xf32>
    %239 = arith.mulf %237, %238 : vector<4x16x128xf32>
    %240 = arith.addf %236, %239 : vector<4x16x128xf32>
    %c15_i32_75 = arith.constant 15 : i32
    %241 = tpu.dynamic_rotate %233 by %c15_i32_75 dim 1 : vector<4x16x128xf32>, i32 -> vector<4x16x128xf32>
    %242 = vector.broadcast %57 : vector<1x16x128xf32> to vector<4x16x128xf32>
    %243 = arith.mulf %241, %242 : vector<4x16x128xf32>
    %244 = arith.addf %240, %243 : vector<4x16x128xf32>
    %245 = vector.shape_cast %70 : vector<1x128xf32> to vector<1x1x128xf32>
    %246 = vector.broadcast %245 : vector<1x1x128xf32> to vector<4x16x128xf32>
    %247 = arith.addf %244, %246 : vector<4x16x128xf32>
    %c1_i32_76 = arith.constant 1 : i32
    %248 = arith.addi %230, %c1_i32_76 : i32
    %249 = arith.index_cast %248 : i32 to index
    %c0_77 = arith.constant 0 : index
    %c0_78 = arith.constant 0 : index
    %250 = vector.load %arg10[%249, %c0_77, %c0_78] : memref<18x16x128xf32, #tpu.memory_space<vmem>>, vector<4x16x128xf32>
    %251 = vector.shape_cast %49 : vector<128xf32> to vector<1x1x128xf32>
    %252 = vector.broadcast %251 : vector<1x1x128xf32> to vector<4x16x128xf32>
    %253 = arith.mulf %250, %252 : vector<4x16x128xf32>
    %c1_i32_79 = arith.constant 1 : i32
    %254 = tpu.dynamic_rotate %250 by %c1_i32_79 dim 1 : vector<4x16x128xf32>, i32 -> vector<4x16x128xf32>
    %255 = vector.broadcast %39 : vector<1x16x128xf32> to vector<4x16x128xf32>
    %256 = arith.mulf %254, %255 : vector<4x16x128xf32>
    %257 = arith.addf %253, %256 : vector<4x16x128xf32>
    %c15_i32_80 = arith.constant 15 : i32
    %258 = tpu.dynamic_rotate %250 by %c15_i32_80 dim 1 : vector<4x16x128xf32>, i32 -> vector<4x16x128xf32>
    %259 = vector.broadcast %63 : vector<1x16x128xf32> to vector<4x16x128xf32>
    %260 = arith.mulf %258, %259 : vector<4x16x128xf32>
    %261 = arith.addf %257, %260 : vector<4x16x128xf32>
    %262 = arith.addf %247, %261 : vector<4x16x128xf32>
    %c2_i32_81 = arith.constant 2 : i32
    %263 = arith.addi %230, %c2_i32_81 : i32
    %264 = arith.index_cast %263 : i32 to index
    %c0_82 = arith.constant 0 : index
    %c0_83 = arith.constant 0 : index
    %265 = vector.load %arg10[%264, %c0_82, %c0_83] : memref<18x16x128xf32, #tpu.memory_space<vmem>>, vector<4x16x128xf32>
    %266 = vector.shape_cast %51 : vector<128xf32> to vector<1x1x128xf32>
    %267 = vector.broadcast %266 : vector<1x1x128xf32> to vector<4x16x128xf32>
    %268 = arith.mulf %265, %267 : vector<4x16x128xf32>
    %c1_i32_84 = arith.constant 1 : i32
    %269 = tpu.dynamic_rotate %265 by %c1_i32_84 dim 1 : vector<4x16x128xf32>, i32 -> vector<4x16x128xf32>
    %270 = vector.broadcast %45 : vector<1x16x128xf32> to vector<4x16x128xf32>
    %271 = arith.mulf %269, %270 : vector<4x16x128xf32>
    %272 = arith.addf %268, %271 : vector<4x16x128xf32>
    %c15_i32_85 = arith.constant 15 : i32
    %273 = tpu.dynamic_rotate %265 by %c15_i32_85 dim 1 : vector<4x16x128xf32>, i32 -> vector<4x16x128xf32>
    %274 = vector.broadcast %69 : vector<1x16x128xf32> to vector<4x16x128xf32>
    %275 = arith.mulf %273, %274 : vector<4x16x128xf32>
    %276 = arith.addf %272, %275 : vector<4x16x128xf32>
    %277 = arith.addf %262, %276 : vector<4x16x128xf32>
    %cst_86 = arith.constant 0.000000e+00 : f32
    %cst_87 = arith.constant 6.000000e+00 : f32
    %278 = vector.broadcast %cst_86 : f32 to vector<4x16x128xf32>
    %279 = arith.maximumf %278, %277 : vector<4x16x128xf32>
    %280 = vector.broadcast %cst_87 : f32 to vector<4x16x128xf32>
    %281 = arith.minimumf %280, %279 : vector<4x16x128xf32>
    %282 = arith.truncf %281 : vector<4x16x128xf32> to vector<4x16x128xbf16>
    %283 = tpu.concatenate %123, %176, %229, %282 in 0 : vector<4x16x128xbf16>, vector<4x16x128xbf16>, vector<4x16x128xbf16>, vector<4x16x128xbf16> -> vector<16x16x128xbf16>
    %284 = vector.shape_cast %283 : vector<16x16x128xbf16> to vector<256x128xbf16>
    %c0_88 = arith.constant 0 : index
    %c0_89 = arith.constant 0 : index
    %285 = vector.load %arg7[%c0_88, %c0_89] : memref<128x128xbf16, #tpu.memory_space<vmem>>, vector<128x128xbf16>
    %cst_90 = arith.constant dense<0.000000e+00> : vector<256x128xf32>
    %286 = tpu.matmul %284, %285, %cst_90 {dimension_numbers = #tpu.dot_dimension_numbers<[1], [0], [0], [1], [0, 0, 1, 1], [], []>} : vector<256x128xbf16>, vector<128x128xbf16>, vector<256x128xf32> -> vector<256x128xf32>
    %c0_91 = arith.constant 0 : index
    %c0_92 = arith.constant 0 : index
    %287 = vector.load %arg8[%c0_91, %c0_92] : memref<1x128xf32, #tpu.memory_space<vmem>>, vector<1x128xf32>
    %288 = vector.broadcast %287 : vector<1x128xf32> to vector<256x128xf32>
    %289 = arith.addf %286, %288 : vector<256x128xf32>
    %c0_93 = arith.constant 0 : index
    %290 = arith.index_cast %1 : i32 to index
    %c0_94 = arith.constant 0 : index
    %c0_95 = arith.constant 0 : index
    %291 = vector.load %arg2[%c0_93, %290, %c0_94, %c0_95] : memref<1x16x16x128xbf16, #tpu.memory_space<vmem>>, vector<1x16x16x128xbf16>
    %292 = vector.shape_cast %291 : vector<1x16x16x128xbf16> to vector<256x128xbf16>
    %293 = arith.extf %292 : vector<256x128xbf16> to vector<256x128xf32>
    %294 = arith.addf %289, %293 : vector<256x128xf32>
    %295 = vector.shape_cast %294 : vector<256x128xf32> to vector<1x16x16x128xf32>
    %296 = arith.truncf %295 : vector<1x16x16x128xf32> to vector<1x16x16x128xbf16>
    %c0_96 = arith.constant 0 : index
    %c0_97 = arith.constant 0 : index
    %c0_98 = arith.constant 0 : index
    %c0_99 = arith.constant 0 : index
    %297 = vector.load %arg9[%c0_96, %c0_97, %c0_98, %c0_99] : memref<1x16x16x128xbf16, #tpu.memory_space<vmem>>, vector<1x16x16x128xbf16>
    tpu.vector_store %arg9[%c0_96, %c0_97, %c0_98, %c0_99], %296 {strides = array<i32>} : memref<1x16x16x128xbf16, #tpu.memory_space<vmem>>, vector<1x16x16x128xbf16>,
    return
  }
  func.func @transform_0(%arg0: i32, %arg1: i32) -> (i32, i32, i32, i32) {
    %c0_i32 = arith.constant 0 : i32
    %c0_i32_0 = arith.constant 0 : i32
    %c0_i32_1 = arith.constant 0 : i32
    %c0_i32_2 = arith.constant 0 : i32
    return %arg0, %c0_i32, %c0_i32_0, %c0_i32_1 : i32, i32, i32, i32
  }
  func.func @transform_1(%arg0: i32, %arg1: i32) -> (i32, i32) {
    %c0_i32 = arith.constant 0 : i32
    %c0_i32_0 = arith.constant 0 : i32
    %c0_i32_1 = arith.constant 0 : i32
    return %c0_i32, %c0_i32_0 : i32, i32
  }
  func.func @transform_2(%arg0: i32, %arg1: i32) -> (i32, i32) {
    %c0_i32 = arith.constant 0 : i32
    %c0_i32_0 = arith.constant 0 : i32
    %c0_i32_1 = arith.constant 0 : i32
    return %c0_i32, %c0_i32_0 : i32, i32
  }
  func.func @transform_3(%arg0: i32, %arg1: i32) -> (i32, i32) {
    %c0_i32 = arith.constant 0 : i32
    %c0_i32_0 = arith.constant 0 : i32
    %c0_i32_1 = arith.constant 0 : i32
    return %c0_i32, %c0_i32_0 : i32, i32
  }
  func.func @transform_4(%arg0: i32, %arg1: i32) -> (i32, i32) {
    %c0_i32 = arith.constant 0 : i32
    %c0_i32_0 = arith.constant 0 : i32
    %c0_i32_1 = arith.constant 0 : i32
    return %c0_i32, %c0_i32_0 : i32, i32
  }
  func.func @transform_5(%arg0: i32, %arg1: i32) -> (i32, i32) {
    %c0_i32 = arith.constant 0 : i32
    %c0_i32_0 = arith.constant 0 : i32
    %c0_i32_1 = arith.constant 0 : i32
    return %c0_i32, %c0_i32_0 : i32, i32
  }
  func.func @transform_6(%arg0: i32, %arg1: i32) -> (i32, i32) {
    %c0_i32 = arith.constant 0 : i32
    %c0_i32_0 = arith.constant 0 : i32
    %c0_i32_1 = arith.constant 0 : i32
    return %c0_i32, %c0_i32_0 : i32, i32
  }
  func.func @transform_7(%arg0: i32, %arg1: i32) -> (i32, i32, i32, i32) {
    %c0_i32 = arith.constant 0 : i32
    %c0_i32_0 = arith.constant 0 : i32
    %c0_i32_1 = arith.constant 0 : i32
    return %arg0, %arg1, %c0_i32, %c0_i32_0 : i32, i32, i32, i32
  }
}

</mosaic_0001>

<bundles_post_ra>
// kernel: identify_block_forward.1
= control target key start
LH: loop header
LB: loop body
LE: loop exit
PB: predicated region body
PF: predicated region fallthrough
CT: control target
= control target key end

     0   :  { %s3285_s24 = smov 0   ;;  %s3287_s25 = smov 0   ;;  %s4994_s0 = inlined_call_operand.vmem [shape: bf16[2,16,16,128], index: 0, kind: input, shape index: {}]   ;;  %s4995_s1 = inlined_call_operand.vmem [shape: bf16[128,128], index: 1, kind: input, shape index: {}]   ;;  %s4996_s2 = inlined_call_operand.vmem [shape: f32[1,128], index: 2, kind: input, shape index: {}]   ;;  %s4997_s3 = inlined_call_operand.vmem [shape: f32[9,128], index: 3, kind: input, shape index: {}]   ;;  %s4998_s4 = inlined_call_operand.vmem [shape: f32[1,128], index: 4, kind: input, shape index: {}]   ;;  %s4999_s5 = inlined_call_operand.vmem [shape: bf16[128,128], index: 5, kind: input, shape index: {}]   ;;  %s5000_s6 = inlined_call_operand.vmem [shape: f32[1,128], index: 6, kind: input, shape index: {}]   ;;  %s5001_s7 = inlined_call_operand.vmem [shape: bf16[2,16,16,128], index: 7, kind: output, shape index: {}]  }
   0x1   :  { %s3289_s26 = smov 0  }
   0x2 LB: > { %s29_s27 = sadd.s32 1, %s3238_s25  ;;  %p2643_p0 = scmp.ge.s32.totalorder %s3242_s26, 1  ;;  %s3242_s26 = sphi %s3289_s26, %s17_s26   ;;  %s3238_s25 = sphi %s3287_s25, %s5283_s25   ;;  %s3234_s24 = sphi %s3285_s24, %s5282_s24  }
   0x3   : > { %p31_p1 = scmp.ge.s32.totalorder %s29_s27, 2  ;;  %p251_p2 = scmp.lt.s32.totalorder %s3242_s26, 3 }
   0x5   : > { %s5285_s27 = smov (%p31_p1, %s29_s27), 0  ;;  %p252_p3 = pnand %p2643_p0, %p251_p2 }
   0x7   : > { %255 = sbr.rel (%p252_p3) target bundleno = 725 (0x2d5), region = 48 }
   0xe   : > { %v3185_v0 = vld [vmem:[%s4995_s1] sm:$0xff]   ;;  %p288_p4 = scmp.lt.s32.totalorder %s3234_s24, 1  ;;  %v3186_v1 = vld [vmem:[%s4995_s1 + $0x8] sm:$0xff]   ;;  %v3187_v2 = vld [vmem:[%s4995_s1 + $0x10] sm:$0xff]   ;;  %v768_v32 = vlaneseq  ;;  %v3244_v39 = vmov 0.0  }
   0xf   : > { %3064 = vmatprep.subr.bf16.mxu0 %v3185_v0  ;;  %v3188_v3 = vld [vmem:[%s4995_s1 + $0x18] sm:$0xff]   ;;  %v3189_v5 = vld [vmem:[%s4995_s1 + $0x20] sm:$0xff]   ;;  %v3190_v6 = vld [vmem:[%s4995_s1 + $0x28] sm:$0xff]   ;;  %v3394_v45 = vrot.slane %v3244_v39, 7  ;;  %v3406_v51 = vrot.slane %v3244_v39, 1 }
  0x10   : > { %s5287_s24 = smov (!%p288_p4, %s3234_s24), 1  ;;  %3065 = vmatpush3.bf16.msra.mxu0 %v3185_v0  ;;  %v3191_v7 = vld [vmem:[%s4995_s1 + $0x30] sm:$0xff]   ;;  %v3192_v8 = vld [vmem:[%s4995_s1 + $0x38] sm:$0xff]   ;;  %v3209_v24 = vld [vmem:[%s4999_s5] sm:$0xff]   ;;  %v3377_v33 = vshrl.u32 %v768_v32, 7 }
  0x11   : > { %3066 = vmatprep.subr.bf16.mxu0 %v3186_v1  ;;  %s2808_s11 = sshll.u32 %s5287_s24, 7  ;;  %3112 = vmatprep.subr.bf16.mxu1 %v3209_v24  ;;  %v3210_v25 = vld [vmem:[%s4999_s5 + $0x8] sm:$0xff]   ;;  %v3211_v26 = vld [vmem:[%s4999_s5 + $0x10] sm:$0xff]   ;;  %v3212_v27 = vld [vmem:[%s4999_s5 + $0x18] sm:$0xff]   ;;  %5040 = vst [vmem:[#allocation6_spill] sm:$0xff] %v3394_v45 }
  0x12   : > { %s3320_s14 = scalar_lea.vmem %s4994_s0, %s2808_s11  ;;  %3113 = vmatpush3.bf16.msra.mxu1 %v3209_v24  ;;  %v3213_v28 = vld [vmem:[%s4999_s5 + $0x20] sm:$0xff]   ;;  %v3214_v29 = vld [vmem:[%s4999_s5 + $0x28] sm:$0xff]   ;;  %v3215_v30 = vld [vmem:[%s4999_s5 + $0x30] sm:$0xff]   ;;  %v787_v34 = vsub.s32 0, %v3377_v33  ;;  %v770_v35 = vadd.s32 8, %v3377_v33  ;;  %vm771_vm0 = vcmp.gt.s32.totalorder %v3377_v33, 0  ;;  %s4925_s29 = scalar_lea.vmem %s5001_s7, %s2808_s11 }
  0x13   : > { %v3193_v4 = vld [vmem:[%s3320_s14] sm:$0xff]   ;;  %v3194_v9 = vld [vmem:[%s3320_s14 + $0x8] sm:$0xff]   ;;  %v3195_v10 = vld [vmem:[%s3320_s14 + $0x10] sm:$0xff]   ;;  %3114 = vmatprep.subr.bf16.mxu1 %v3210_v25  ;;  %v805_v37 = vsub.s32 2, %v3377_v33  ;;  %v2673_v40 = vsel %vm771_vm0, 1.0, %v3244_v39  ;;  %v834_v41 = vsub.s32 1, %v3377_v33 }
  0x14   : > { %3067 = vmatpush3.bf16.msra.mxu0 %v3186_v1  ;;  %3080 = vmatprep.mubr.bf16.mxu0 %v3193_v4  ;;  %v3196_v11 = vld [vmem:[%s3320_s14 + $0x18] sm:$0xff]   ;;  %v3197_v12 = vld [vmem:[%s3320_s14 + $0x20] sm:$0xff]   ;;  %v3198_v13 = vld [vmem:[%s3320_s14 + $0x28] sm:$0xff]   ;;  %vm778_vm1 = vcmp.lt.s32.totalorder %v770_v35, 15  ;;  %5042 = vst [vmem:[#allocation8_spill] sm:$0xff] %v3406_v51  ;;  %v793_v52 = vsub.s32 3, %v3377_v33 }
  0x15   : > { %3068 = vmatprep.subr.bf16.mxu0 %v3187_v2  ;;  %v3199_v14 = vld [vmem:[%s3320_s14 + $0x30] sm:$0xff]   ;;  %v3200_v15 = vld [vmem:[%s3320_s14 + $0x38] sm:$0xff]   ;;  %v3201_v16 = vld [vmem:[%s3320_s14 + $0x40] sm:$0xff]   ;;  %v2674_v43 = vsel %vm778_vm1, 1.0, %v3244_v39  ;;  %v799_v53 = vsub.s32 6, %v3377_v33  ;;  %v937_v54 = vsub.s32 4, %v3377_v33 }
  0x16   : > { %v3202_v17 = vld [vmem:[%s3320_s14 + $0x48] sm:$0xff]   ;;  %v3203_v18 = vld [vmem:[%s3320_s14 + $0x50] sm:$0xff]   ;;  %v3204_v19 = vld [vmem:[%s3320_s14 + $0x58] sm:$0xff]   ;;  %3115 = vmatpush3.bf16.msra.mxu1 %v3210_v25  ;;  %v811_v55 = vsub.s32 5, %v3377_v33  ;;  %v1032_v61 = vsub.s32 7, %v3377_v33  ;;  %vm852_vm2 = vcmp.lt.s32.totalorder %v3377_v33, 1 }
  0x17   : > { %v3205_v20 = vld [vmem:[%s3320_s14 + $0x60] sm:$0xff]   ;;  %v3206_v21 = vld [vmem:[%s3320_s14 + $0x68] sm:$0xff]   ;;  %v3207_v22 = vld [vmem:[%s3320_s14 + $0x70] sm:$0xff]   ;;  %3116 = vmatprep.subr.bf16.mxu1 %v3211_v26  ;;  %vm885_vm3 = vcmp.lt.s32.totalorder %v3377_v33, 7 }
  0x18   : > { %3069 = vmatpush3.bf16.msra.mxu0 %v3187_v2  ;;  %v3208_v23 = vld [vmem:[%s3320_s14 + $0x78] sm:$0xff]   ;;  %v783_v36 = vld [vmem:[%s4997_s3] sm:$0xff] }
  0x19   : > { %3070 = vmatprep.subr.bf16.mxu0 %v3188_v3  ;;  %v3216_v31 = vld [vmem:[%s4999_s5 + $0x38] sm:$0xff]   ;;  %v3386_v38 = vrot.slane %v783_v36, %v787_v34  ;;  %v3389_v42 = vrot.slane %v783_v36, %v805_v37  ;;  %v3396_v46 = vrot.slane %v783_v36, %v834_v41  ;;  %v3415_v56 = vld [vmem:[%s4996_s2] ss:$0 sm:$0xff]  ;;  %v3422_v63 = vrot.slane %v783_v36, %v793_v52 }
  0x1a   : > { %3117 = vmatpush3.bf16.msra.mxu1 %v3211_v26  ;;  %v3424_v0 = vrot.slane %v783_v36, %v799_v53  ;;  %v3429_v4 = vrot.slane %v783_v36, %v937_v54 }
  0x1b   : > { %3118 = vmatprep.subr.bf16.mxu1 %v3212_v27  ;;  %5037 = vst [vmem:[#allocation3_spill] sm:$0xff] %v3386_v38  ;;  %5038 = vst [vmem:[#allocation4_spill] sm:$0xff] %v3389_v42  ;;  %v3392_v44 = vmul.f32 %v2673_v40, %v3386_v38  ;;  %v3399_v47 = vmul.f32 %v2674_v43, %v3389_v42  ;;  %v836_v48 = vmul.f32 0.0, %v3396_v46 }
  0x1c   : > { %3071 = vmatpush3.bf16.msra.mxu0 %v3188_v3  ;;  %v862_v50 = vmul.f32 %v3394_v45, %v3386_v38  ;;  %v894_v59 = vmul.f32 %v3406_v51, %v3389_v42  ;;  %v3427_v3 = vrot.slane %v783_v36, %v811_v55 }
  0x1d   : > { %3072 = vmatprep.subr.bf16.mxu0 %v3189_v5  ;;  %5039 = vst [vmem:[#allocation5_spill] sm:$0xff] %v3392_v44  ;;  %5041 = vst [vmem:[#allocation7_spill] sm:$0xff] %v3399_v47  ;;  %v861_v49 = vmul.f32 %v3394_v45, %v3392_v44  ;;  %v895_v60 = vmul.f32 %v3406_v51, %v3399_v47 }
  0x1e   : > { %3119 = vmatpush3.bf16.msra.mxu1 %v3212_v27  ;;  %v870_v58 = vadd.f32 %v862_v50, %v836_v48 }
  0x1f   : > { %3120 = vmatprep.subr.bf16.mxu1 %v3213_v28  ;;  %v869_v57 = vadd.f32 %v861_v49, %v836_v48 }
  0x20   : > { %3073 = vmatpush3.bf16.msra.mxu0 %v3189_v5 }
  0x21   : > { %3074 = vmatprep.subr.bf16.mxu0 %v3190_v6 }
  0x22   : > { %3121 = vmatpush3.bf16.msra.mxu1 %v3213_v28 }
  0x23   : > { %3122 = vmatprep.subr.bf16.mxu1 %v3214_v29 }
  0x24   : > { %3075 = vmatpush3.bf16.msra.mxu0 %v3190_v6 }
  0x25   : > { %3076 = vmatprep.subr.bf16.mxu0 %v3191_v7 }
  0x26   : > { %3123 = vmatpush3.bf16.msra.mxu1 %v3214_v29 }
  0x27   : > { %3124 = vmatprep.subr.bf16.mxu1 %v3215_v30 }
  0x28   : > { %3077 = vmatpush3.bf16.msra.mxu0 %v3191_v7  ;;  %v3435_v7 = vld [vmem:[%s4997_s3 + $0x8] ss:$0 sm:$0xff] }
  0x29   : > { %3078 = vmatprep.subr.bf16.mxu0 %v3192_v8 }
  0x2a   : > { %3125 = vmatpush3.bf16.msra.mxu1 %v3215_v30 }
  0x2b   : > { %3126 = vmatprep.subr.bf16.mxu1 %v3216_v31 }
  0x2c   : > { %3079 = vmatpush3.bf16.msra.mxu0 %v3192_v8  ;;  %v902_v8 = vadd.f32 %v894_v59, %v869_v57 }
  0x2e   : > { %3127 = vmatpush3.bf16.msra.mxu1 %v3216_v31 }
  0x2f   : > { %3081 = vmatmul.mubr.bf16.vlgmr.msra.gmra.mrb[0].mxu0 %v3194_v9  ;;  %v903_v9 = vadd.f32 %v895_v60, %v870_v58 }
  0x30   : > { %3084 = vmatprep.mubr.bf16.mxu0 %v3195_v10 }
  0x37   : > { %3085 = vmatmul.mubr.bf16.gmra.mrb[4].mxu0 %v3196_v11 }
  0x38   : > { %3088 = vmatprep.mubr.bf16.mxu0 %v3197_v12 }
  0x3f   : > { %3089 = vmatmul.mubr.bf16.gmra.mrb[8].mxu0 %v3198_v13  ;;  %v3439_v13 = vrot.slane %v783_v36, %v1032_v61 }
  0x40   : > { %3092 = vmatprep.mubr.bf16.mxu0 %v3199_v14  ;;  %v3444_v14 = vld [vmem:[%s4998_s4] ss:$0 sm:$0xff] }
  0x41   : > { %v3464_v25 = vadd.f32 %v3444_v14, %v902_v8  ;;  %v3467_v26 = vadd.f32 %v3444_v14, %v903_v9 }
  0x47   : > { %3093 = vmatmul.mubr.bf16.gmra.mrb[12].mxu0 %v3200_v15 }
  0x48   : > { %3096 = vmatprep.mubr.bf16.mxu0 %v3201_v16 }
  0x4f   : > { %3097 = vmatmul.mubr.bf16.gmra.mrb[16].mxu0 %v3202_v17  ;;  %v3448_v17 = vmul.f32 %v2673_v40, %v3422_v63 }
  0x50   : > { %3100 = vmatprep.mubr.bf16.mxu0 %v3203_v18  ;;  %v3451_v18 = vmul.f32 %v2673_v40, %v3424_v0 }
  0x57   : > { %3101 = vmatmul.mubr.bf16.gmra.mrb[20].mxu0 %v3204_v19 }
  0x58   : > { %3104 = vmatprep.mubr.bf16.mxu0 %v3205_v20 }
  0x5f   : > { %3105 = vmatmul.mubr.bf16.gmra.mrb[24].mxu0 %v3206_v21  ;;  %v3456_v21 = vmul.f32 %v2674_v43, %v3427_v3 }
  0x60   : > { %3108 = vmatprep.mubr.bf16.mxu0 %v3207_v22  ;;  %v3459_v22 = vmul.f32 %v3435_v7, %v2674_v43 }
  0x67   : > { %3109 = vmatmul.mubr.bf16.gmra.mrb[28].mxu0 %v3208_v23 }
 0x102   : > { %v3082_v62 = vpop.f32.mrb[0].mxu0 }
 0x103   : > { %v553_v1 = vadd.f32 %v3082_v62, %v3415_v56  ;;  %v544_v2 = vpop.f32.mrb[1].mxu0 }
 0x104   : > { %v545_v5 = vadd.f32 %v3415_v56, %v544_v2  ;;  %v3083_v6 = vpop.f32.mrb[2].mxu0 }
 0x105   : > { %v673_v10 = vmax.f32 %v553_v1, 0.0  ;;  %v556_v11 = vadd.f32 %v3083_v6, %v3415_v56  ;;  %v547_v12 = vpop.f32.mrb[3].mxu0 }
 0x106   : > { %v671_v15 = vmax.f32 %v545_v5, 0.0  ;;  %v548_v16 = vadd.f32 %v3415_v56, %v547_v12 }
 0x107   : > { %v3453_v19 = vmin.f32 %v673_v10, 6.0  ;;  %v674_v20 = vmax.f32 %v556_v11, 0.0 }
 0x108   : > { %v3461_v23 = vmin.f32 %v671_v15, 6.0  ;;  %v672_v24 = vmax.f32 %v548_v16, 0.0 }
 0x109   : > { %v3471_v27 = vmul.f32 %v3396_v46, %v3453_v19  ;;  %v846_v28 = vrot.slane %v3453_v19, 7  ;;  %v3476_v29 = vmul.f32 %v3429_v4, %v3453_v19  ;;  %v3478_v30 = vmin.f32 %v674_v20, 6.0 }
 0x10a   : > { %v3482_v31 = vmul.f32 %v3396_v46, %v3461_v23  ;;  %v845_v32 = vrot.slane %v3461_v23, 7  ;;  %v5002_v34 = vrot.slane %v3461_v23, 1  ;;  %v3488_v35 = vmul.f32 %v3429_v4, %v3461_v23  ;;  %v3086_v36 = vpop.f32.mrb[4].mxu0 }
 0x10b   : > { %v3493_v37 = vmul.f32 %v3396_v46, %v3478_v30  ;;  %v850_v39 = vrot.slane %v3478_v30, 7  ;;  %v3498_v40 = vmul.f32 %v3429_v4, %v3478_v30  ;;  %v704_v41 = vmin.f32 %v672_v24, 6.0  ;;  %v560_v43 = vpop.f32.mrb[5].mxu0 }
 0x10c   : > { %v569_v48 = vadd.f32 %v3086_v36, %v3415_v56  ;;  %v561_v49 = vadd.f32 %v3415_v56, %v560_v43  ;;  %v3087_v50 = vpop.f32.mrb[6].mxu0  ;;  %v879_v52 = vrot.slane %v3453_v19, 1  ;;  %v883_v53 = vrot.slane %v3478_v30, 1 }
 0x10d   : > { %v839_v54 = vmul.f32 %v3396_v46, %v704_v41  ;;  %v849_v55 = vrot.slane %v704_v41, 7  ;;  %v882_v57 = vrot.slane %v704_v41, 1  ;;  %v3506_v58 = vmul.f32 %v3429_v4, %v704_v41  ;;  %v563_v59 = vpop.f32.mrb[7].mxu0 }
 0x10e   : > { %v677_v60 = vmax.f32 %v569_v48, 0.0  ;;  %v675_v61 = vmax.f32 %v561_v49, 0.0  ;;  %v572_v62 = vadd.f32 %v3087_v50, %v3415_v56  ;;  %v564_v1 = vadd.f32 %v3415_v56, %v563_v59 }
 0x10f   : > { %v3512_v2 = vsel %vm852_vm2, %v845_v32, %v849_v55  ;;  %v3516_v5 = vsel %vm852_vm2, %v846_v28, %v850_v39  ;;  %v858_v6 = vsel %vm852_vm2, %v849_v55, %v845_v32  ;;  %v3522_v8 = vsel %vm852_vm2, %v850_v39, %v846_v28 }
 0x110   : > { %v864_v9 = vmul.f32 %v3512_v2, %v3386_v38  ;;  %v3526_v10 = vmin.f32 %v677_v60, 6.0  ;;  %v3528_v11 = vmin.f32 %v675_v61, 6.0  ;;  %v678_v12 = vmax.f32 %v572_v62, 0.0 }
 0x111   : > { %v676_v15 = vmax.f32 %v564_v1, 0.0  ;;  %v3531_v16 = vmul.f32 %v858_v6, %v3392_v44  ;;  %v3535_v20 = vmul.f32 %v3522_v8, %v3392_v44  ;;  %v3539_v24 = vmul.f32 %v3516_v5, %v3386_v38 }
 0x112   : > { %v3541_v28 = vadd.f32 %v864_v9, %v839_v54  ;;  %v3545_v32 = vmul.f32 %v3429_v4, %v3526_v10  ;;  %v3090_v41 = vpop.f32.mrb[8].mxu0  ;;  %v3551_v43 = vmul.f32 %v3396_v46, %v3526_v10  ;;  %v3555_v48 = vmul.f32 %v3396_v46, %v3528_v11 }
 0x113   : > { %v576_v54 = vpop.f32.mrb[9].mxu0  ;;  %v3561_v55 = vmul.f32 %v3429_v4, %v3528_v11  ;;  %v3563_v59 = vmin.f32 %v678_v12, 6.0  ;;  %v3565_v60 = vmin.f32 %v676_v15, 6.0  ;;  %v585_v61 = vadd.f32 %v3090_v41, %v3415_v56 }
 0x114   : > { %5043 = vst [vmem:[#allocation9_spill] sm:$0xff] %v3545_v32  ;;  %5044 = vst [vmem:[#allocation10_spill] sm:$0xff] %v3551_v43  ;;  %v3091_v62 = vpop.f32.mrb[10].mxu0  ;;  %v577_v1 = vadd.f32 %v3415_v56, %v576_v54  ;;  %v887_v36 = vsel %vm885_vm3, %v5002_v34, %v882_v57  ;;  %v3576_v50 = vsel %vm885_vm3, %v879_v52, %v883_v53 }
 0x115   : > { %5045 = vst [vmem:[#allocation11_spill] sm:$0xff] %v3555_v48  ;;  %5046 = vst [vmem:[#allocation12_spill] sm:$0xff] %v3561_v55  ;;  %v588_v9 = vadd.f32 %v3091_v62, %v3415_v56  ;;  %v579_v39 = vpop.f32.mrb[11].mxu0  ;;  %v3580_v12 = vmul.f32 %v3429_v4, %v3563_v59  ;;  %v3586_v54 = vmul.f32 %v3396_v46, %v3563_v59  ;;  %v681_v45 = vmax.f32 %v585_v61, 0.0 }
 0x116   : > { %v3590_v62 = vmul.f32 %v3396_v46, %v3565_v60  ;;  %v3596_v51 = vmul.f32 %v3429_v4, %v3565_v60  ;;  %v679_v15 = vmax.f32 %v577_v1, 0.0  ;;  %v580_v41 = vadd.f32 %v3415_v56, %v579_v39 }
 0x117   : > { %5047 = vst [vmem:[#allocation13_spill] sm:$0xff] %v3580_v12  ;;  %5048 = vst [vmem:[#allocation14_spill] sm:$0xff] %v3586_v54  ;;  %v682_v43 = vmax.f32 %v588_v9, 0.0  ;;  %v5051_v12 = vrot.slane %v3461_v23, 1  ;;  %v3605_v32 = vsel %vm885_vm3, %v883_v53, %v879_v52  ;;  %v3608_v34 = vmul.f32 %v887_v36, %v3389_v42 }
 0x118   : > { %5049 = vst [vmem:[#allocation15_spill] sm:$0xff] %v3590_v62  ;;  %5050 = vst [vmem:[#allocation16_spill] sm:$0xff] %v3596_v51  ;;  %v3612_v49 = vmul.f32 %v3576_v50, %v3389_v42  ;;  %v3614_v61 = vmin.f32 %v681_v45, 6.0  ;;  %v3616_v1 = vmin.f32 %v679_v15, 6.0  ;;  %v680_v23 = vmax.f32 %v580_v41, 0.0 }
 0x119   : > { %v891_v54 = vsel %vm885_vm3, %v882_v57, %v5051_v12  ;;  %v3618_v39 = vmin.f32 %v682_v43, 6.0  ;;  %v3626_v53 = vmul.f32 %v3605_v32, %v3399_v47  ;;  %v963_v42 = vmul.f32 %v858_v6, %v3448_v17 }
 0x11a   : > { %5052 = vst [vmem:[#allocation17_spill] sm:$0xff] %v3614_v61  ;;  %5053 = vst [vmem:[#allocation18_spill] sm:$0xff] %v3616_v1  ;;  %v3094_v9 = vpop.f32.mrb[12].mxu0  ;;  %v3622_v52 = vmul.f32 %v891_v54, %v3399_v47  ;;  %v3631_v45 = vmul.f32 %v3396_v46, %v3614_v61  ;;  %v3637_v41 = vmul.f32 %v3429_v4, %v3614_v61  ;;  %v3659_v62 = vmin.f32 %v680_v23, 6.0 }
 0x11b   : > { %5054 = vst [vmem:[#allocation19_spill] sm:$0xff] %v3618_v39  ;;  %v601_v57 = vadd.f32 %v3094_v9, %v3415_v56  ;;  %v592_v12 = vpop.f32.mrb[13].mxu0  ;;  %v3643_v6 = vmul.f32 %v3396_v46, %v3616_v1  ;;  %v3651_v15 = vmul.f32 %v3396_v46, %v3618_v39  ;;  %v3657_v47 = vmul.f32 %v3429_v4, %v3618_v39 }
 0x11c   : > { %5055 = vst [vmem:[#allocation20_spill] sm:$0xff] %v3631_v45  ;;  %5056 = vst [vmem:[#allocation21_spill] sm:$0xff] %v3637_v41  ;;  %v3095_v9 = vpop.f32.mrb[14].mxu0  ;;  %v3647_v45 = vmul.f32 %v3429_v4, %v3616_v1  ;;  %v593_v48 = vadd.f32 %v3415_v56, %v592_v12  ;;  %v3668_v41 = vmul.f32 %v3522_v8, %v3448_v17 }
 0x11d   : > { %5057 = vst [vmem:[#allocation22_spill] sm:$0xff] %v3643_v6  ;;  %v595_v43 = vpop.f32.mrb[15].mxu0  ;;  %5059 = vst [vmem:[#allocation24_spill] sm:$0xff] %v3651_v15  ;;  %v685_v6 = vmax.f32 %v601_v57, 0.0  ;;  %v964_v15 = vmul.f32 %v3512_v2, %v3422_v63  ;;  %v3672_v61 = vmul.f32 %v3516_v5, %v3422_v63  ;;  %v3678_v12 = vmul.f32 %v3396_v46, %v3659_v62 }
 0x11e   : > { %5058 = vst [vmem:[#allocation23_spill] sm:$0xff] %v3647_v45  ;;  %5060 = vst [vmem:[#allocation25_spill] sm:$0xff] %v3657_v47  ;;  %v604_v45 = vadd.f32 %v3095_v9, %v3415_v56  ;;  %v596_v1 = vadd.f32 %v3415_v56, %v595_v43  ;;  %v3682_v43 = vmul.f32 %v3429_v4, %v3659_v62  ;;  %v683_v9 = vmax.f32 %v593_v48, 0.0 }
 0x11f   : > { %5061 = vst [vmem:[#allocation26_spill] sm:$0xff] %v3678_v12  ;;  %v3684_v2 = vmin.f32 %v685_v6, 6.0  ;;  %v971_v44 = vadd.f32 %v963_v42, %v3488_v35  ;;  %v972_v23 = vadd.f32 %v964_v15, %v3506_v58  ;;  %v995_v57 = vmul.f32 %v887_v36, %v3427_v3 }
 0x120   : > { %5062 = vst [vmem:[#allocation27_spill] sm:$0xff] %v3682_v43  ;;  %v686_v47 = vmax.f32 %v604_v45, 0.0  ;;  %v684_v39 = vmax.f32 %v596_v1, 0.0  ;;  %v996_v51 = vmul.f32 %v891_v54, %v3456_v21  ;;  %v3700_v35 = vmin.f32 %v683_v9, 6.0 }
 0x121   : > { %5063 = vst [vmem:[#allocation28_spill] sm:$0xff] %v3684_v2  ;;  %v3692_v12 = vmul.f32 %v3429_v4, %v3684_v2  ;;  %v3698_v1 = vmul.f32 %v3396_v46, %v3684_v2  ;;  %v3708_v54 = vmul.f32 %v3576_v50, %v3427_v3  ;;  %v3712_v15 = vmul.f32 %v3605_v32, %v3456_v21 }
 0x122   : > { %v3098_v38 = vpop.f32.mrb[16].mxu0  ;;  %5066 = vst [vmem:[#allocation31_spill] sm:$0xff] %v3700_v35  ;;  %v3702_v58 = vmin.f32 %v686_v47, 6.0  ;;  %v3704_v36 = vmin.f32 %v684_v39, 6.0  ;;  %v1003_v48 = vadd.f32 %v995_v57, %v971_v44  ;;  %v1004_v6 = vadd.f32 %v996_v51, %v972_v23 }
 0x123   : > { %v608_v55 = vpop.f32.mrb[17].mxu0  ;;  %5064 = vst [vmem:[#allocation29_spill] sm:$0xff] %v3692_v12  ;;  %5065 = vst [vmem:[#allocation30_spill] sm:$0xff] %v3698_v1  ;;  %v1034_v1 = vmul.f32 %v3439_v13, %v3453_v19  ;;  %v3718_v47 = vmul.f32 %v3396_v46, %v3700_v35  ;;  %v3724_v12 = vmul.f32 %v3429_v4, %v3700_v35 }
 0x124   : > { %v3099_v42 = vpop.f32.mrb[18].mxu0  ;;  %5067 = vst [vmem:[#allocation32_spill] sm:$0xff] %v3702_v58  ;;  %5068 = vst [vmem:[#allocation33_spill] sm:$0xff] %v3704_v36  ;;  %v3728_v2 = vmul.f32 %v3429_v4, %v3702_v58  ;;  %v3734_v19 = vmul.f32 %v3396_v46, %v3702_v58  ;;  %v3738_v23 = vmul.f32 %v3396_v46, %v3704_v36  ;;  %v5076_v58 = vrot.slane %v3528_v11, 7 }
 0x125   : > { %v611_v45 = vpop.f32.mrb[19].mxu0  ;;  %5069 = vst [vmem:[#allocation34_spill] sm:$0xff] %v3718_v47  ;;  %5070 = vst [vmem:[#allocation35_spill] sm:$0xff] %v3724_v12  ;;  %v3744_v39 = vmul.f32 %v3429_v4, %v3704_v36  ;;  %v1011_v44 = vadd.f32 %v1003_v48, %v3464_v25  ;;  %v1012_v51 = vadd.f32 %v1004_v6, %v3467_v26  ;;  %v5080_v36 = vrot.slane %v3528_v11, 1 }
 0x126   : > { %5071 = vst [vmem:[#allocation36_spill] sm:$0xff] %v3728_v2  ;;  %5072 = vst [vmem:[#allocation37_spill] sm:$0xff] %v3734_v19  ;;  %v1035_v2 = vmul.f32 %v3439_v13, %v3478_v30  ;;  %v1058_v19 = vmul.f32 %v3522_v8, %v3451_v18  ;;  %v1059_v57 = vmul.f32 %v3516_v5, %v3424_v0 }
 0x127   : > { %5073 = vst [vmem:[#allocation38_spill] sm:$0xff] %v3738_v23  ;;  %5074 = vst [vmem:[#allocation39_spill] sm:$0xff] %v3744_v39  ;;  %v1090_v9 = vmul.f32 %v3435_v7, %v3576_v50  ;;  %v1091_v23 = vmul.f32 %v3605_v32, %v3459_v22  ;;  %v617_v25 = vadd.f32 %v3098_v38, %v3415_v56  ;;  %v5075_v50 = vrot.slane %v3565_v60, 7 }
 0x128   : > { %v1066_v6 = vadd.f32 %v1058_v19, %v1034_v1  ;;  %v609_v30 = vadd.f32 %v3415_v56, %v608_v55  ;;  %v620_v8 = vadd.f32 %v3099_v42, %v3415_v56  ;;  %v612_v48 = vadd.f32 %v3415_v56, %v611_v45 }
 0x129   : > { %v1067_v5 = vadd.f32 %v1059_v57, %v1035_v2  ;;  %v689_v12 = vmax.f32 %v617_v25, 0.0  ;;  %v3774_v38 = vsel %vm852_vm2, %v5076_v58, %v5075_v50  ;;  %v5077_v32 = vmov %v5076_v58 }
 0x12a   : > { %v3752_v47 = vpop.f32.mrb[20].mxu0  ;;  %v5078_v55 = vmov %v5075_v50  ;;  %v1098_v2 = vadd.f32 %v1090_v9, %v1066_v6  ;;  %v687_v45 = vmax.f32 %v609_v30, 0.0  ;;  %v690_v19 = vmax.f32 %v620_v8, 0.0 }
 0x12b   : > { %v3761_v26 = vpop.f32.mrb[21].mxu0  ;;  %v3782_v1 = vsel %vm852_vm2, %v5078_v55, %v5077_v32  ;;  %v688_v57 = vmax.f32 %v612_v48, 0.0  ;;  %v1099_v25 = vadd.f32 %v1091_v23, %v1067_v5  ;;  %v3786_v35 = vmin.f32 %v689_v12, 6.0 }
 0x12c   : > { %v3766_v39 = vpop.f32.mrb[22].mxu0  ;;  %v871_v58 = vadd.f32 %v3531_v16, %v3482_v31  ;;  %v5079_v50 = vrot.slane %v3565_v60, 1  ;;  %v1106_v55 = vadd.f32 %v1098_v2, %v1011_v44  ;;  %v3798_v43 = vmin.f32 %v687_v45, 6.0 }
 0x12d   : > { %v3784_v42 = vpop.f32.mrb[23].mxu0  ;;  %v3800_v9 = vmin.f32 %v690_v19, 6.0  ;;  %v3802_v6 = vmin.f32 %v688_v57, 6.0  ;;  %v1107_v12 = vadd.f32 %v1099_v25, %v1012_v51  ;;  %v3806_v23 = vmul.f32 %v3396_v46, %v3786_v35 }
 0x12e   : > { %v3796_v32 = vsel %vm885_vm3, %v5080_v36, %v5079_v50  ;;  %v1114_v30 = vmax.f32 %v1106_v55, 0.0  ;;  %v3812_v36 = vmul.f32 %v3429_v4, %v3786_v35  ;;  %v3820_v5 = vmul.f32 %v3396_v46, %v3798_v43 }
 0x12f   : > { %5081 = vst [vmem:[#allocation40_spill] sm:$0xff] %v3806_v23  ;;  %v1115_v51 = vmax.f32 %v1107_v12, 0.0  ;;  %v3824_v2 = vmul.f32 %v3429_v4, %v3798_v43  ;;  %v3828_v45 = vmul.f32 %v3396_v46, %v3800_v9  ;;  %v3836_v55 = vmul.f32 %v3429_v4, %v3800_v9 }
 0x130   : > { %5082 = vst [vmem:[#allocation41_spill] sm:$0xff] %v3812_v36  ;;  %5083 = vst [vmem:[#allocation42_spill] sm:$0xff] %v3820_v5  ;;  %v1122_v57 = vmin.f32 %v1114_v30, 6.0  ;;  %v3844_v44 = vmul.f32 %v3396_v46, %v3802_v6  ;;  %v3850_v50 = vmul.f32 %v3429_v4, %v3802_v6  ;;  %v5088_v25 = vrot.slane %v3528_v11, 1 }
 0x131   : > { %5084 = vst [vmem:[#allocation43_spill] sm:$0xff] %v3828_v45  ;;  %5085 = vst [vmem:[#allocation44_spill] sm:$0xff] %v3836_v55  ;;  %v1123_v16 = vmin.f32 %v1115_v51, 6.0  ;;  %v5089_v45 = vrot.slane %v3565_v60, 1  ;;  %v904_v8 = vadd.f32 %v3608_v34, %v871_v58  ;;  %v905_v31 = vadd.f32 %v3622_v52, %v3541_v28 }
 0x132   : > { %v3816_v48 = vpop.f32.mrb[24].mxu0  ;;  %5086 = vst [vmem:[#allocation45_spill] sm:$0xff] %v3844_v44  ;;  %5087 = vst [vmem:[#allocation46_spill] sm:$0xff] %v3850_v50  ;;  %v973_v55 = vadd.f32 %v3668_v41, %v3476_v29  ;;  %v974_v36 = vadd.f32 %v3672_v61, %v3498_v40  ;;  %v1036_v44 = vmul.f32 %v3439_v13, %v3528_v11 }
 0x133   : > { %v3830_v19 = vpop.f32.mrb[25].mxu0  ;;  %v3858_v51 = vsel %vm885_vm3, %v5089_v45, %v5088_v25  ;;  %v1130_v23 = vpack.c.bf16 %v1123_v16, %v1122_v57  ;;  %v918_v5 = vadd.f32 %v3444_v14, %v904_v8  ;;  %v919_v45 = vadd.f32 %v3444_v14, %v905_v31 }
 0x134   : > { %v3838_v12 = vpop.f32.mrb[26].mxu0  ;;  %v1037_v34 = vmul.f32 %v3439_v13, %v3565_v60  ;;  %v1060_v28 = vmul.f32 %v3782_v1, %v3451_v18  ;;  %v1005_v52 = vadd.f32 %v3708_v54, %v973_v55  ;;  %v1006_v29 = vadd.f32 %v3712_v15, %v974_v36 }
 0x135   : > { %v3846_v30 = vpop.f32.mrb[27].mxu0  ;;  %3128 = vmatprep.mubr.bf16.mxu1 %v1130_v23  ;;  %v1061_v40 = vmul.f32 %v3774_v38, %v3424_v0  ;;  %v1092_v11 = vmul.f32 %v3435_v7, %v3796_v32  ;;  %v1093_v41 = vmul.f32 %v3858_v51, %v3459_v22  ;;  %v873_v60 = vadd.f32 %v3535_v20, %v3471_v27 }
 0x136   : > { %v1068_v61 = vadd.f32 %v1060_v28, %v1036_v44  ;;  %v874_v58 = vadd.f32 %v3539_v24, %v3493_v37  ;;  %v1013_v54 = vadd.f32 %v1005_v52, %v918_v5  ;;  %v1014_v15 = vadd.f32 %v1006_v29, %v919_v45 }
 0x137   : > { %v1069_v31 = vadd.f32 %v1061_v40, %v1037_v34  ;;  %v5090_v16 = vrot.slane %v3563_v59, 7  ;;  %v5091_v36 = vrot.slane %v3526_v10, 7  ;;  %v906_v27 = vadd.f32 %v3612_v49, %v873_v60 }
 0x138   : > { %v1100_v57 = vadd.f32 %v1092_v11, %v1068_v61  ;;  %v907_v37 = vadd.f32 %v3626_v53, %v874_v58  ;;  %v967_v45 = vmul.f32 %v3782_v1, %v3448_v17  ;;  %v968_v34 = vmul.f32 %v3774_v38, %v3422_v63 }
 0x139   : > { %v3895_v44 = vsel %vm852_vm2, %v5091_v36, %v5090_v16  ;;  %v5092_v20 = vmov %v5091_v36  ;;  %v5093_v24 = vmov %v5090_v16  ;;  %v1101_v55 = vadd.f32 %v1093_v41, %v1069_v31  ;;  %v5098_v31 = vld [vmem:[#allocation12_spill] sm:$0xff] }
 0x13a   : > { %v3887_v23 = vpop.f32.mrb[28].mxu0  ;;  %v3907_v5 = vsel %vm852_vm2, %v5093_v24, %v5092_v20  ;;  %v5094_v49 = vrot.slane %v3563_v59, 1  ;;  %v5095_v53 = vrot.slane %v3526_v10, 1  ;;  %v1108_v29 = vadd.f32 %v1100_v57, %v1013_v54  ;;  %v5099_v36 = vld [vmem:[#allocation16_spill] sm:$0xff] }
 0x13b   : > { %v3897_v8 = vpop.f32.mrb[29].mxu0  ;;  %v920_v40 = vadd.f32 %v3444_v14, %v906_v27  ;;  %v921_v11 = vadd.f32 %v3444_v14, %v907_v37  ;;  %v1109_v58 = vadd.f32 %v1101_v55, %v1014_v15  ;;  %v975_v16 = vadd.f32 %v967_v45, %v5098_v31 }
 0x13c   : > { %v3909_v25 = vpop.f32.mrb[30].mxu0  ;;  %v3921_v28 = vsel %vm885_vm3, %v5095_v53, %v5094_v49  ;;  %v5096_v61 = vmov %v5095_v53  ;;  %v5097_v41 = vmov %v5094_v49  ;;  %v976_v20 = vadd.f32 %v968_v34, %v5099_v36 }
 0x13d   : > { %v3923_v52 = vpop.f32.mrb[31].mxu0  ;;  %v3933_v60 = vsel %vm885_vm3, %v5097_v41, %v5096_v61  ;;  %v999_v54 = vmul.f32 %v3796_v32, %v3427_v3  ;;  %v1116_v57 = vmax.f32 %v1108_v29, 0.0  ;;  %v1000_v27 = vmul.f32 %v3858_v51, %v3456_v21 }
 0x13e   : > { %v1038_v37 = vmul.f32 %v3439_v13, %v3526_v10  ;;  %v1039_v24 = vmul.f32 %v3439_v13, %v3563_v59  ;;  %v1117_v49 = vmax.f32 %v1109_v58, 0.0  ;;  %v1062_v15 = vmul.f32 %v3907_v5, %v3451_v18 }
 0x13f   : > { %v1007_v53 = vadd.f32 %v999_v54, %v975_v16  ;;  %v1063_v55 = vmul.f32 %v3895_v44, %v3424_v0  ;;  %v1124_v45 = vmin.f32 %v1116_v57, 6.0  ;;  %v1008_v34 = vadd.f32 %v1000_v27, %v976_v20 }
 0x140   : > { %v1094_v29 = vmul.f32 %v3435_v7, %v3921_v28  ;;  %v1095_v61 = vmul.f32 %v3933_v60, %v3459_v22  ;;  %v1125_v10 = vmin.f32 %v1117_v49, 6.0  ;;  %v1070_v31 = vadd.f32 %v1062_v15, %v1038_v37 }
 0x141   : > { %v1015_v41 = vadd.f32 %v1007_v53, %v920_v40  ;;  %v1071_v59 = vadd.f32 %v1063_v55, %v1039_v24  ;;  %v1016_v58 = vadd.f32 %v1008_v34, %v921_v11  ;;  %v633_v16 = vadd.f32 %v3752_v47, %v3415_v56  ;;  %v5100_v24 = vld [vmem:[#allocation5_spill] sm:$0xff] }
 0x142   : > { %v625_v36 = vadd.f32 %v3415_v56, %v3761_v26  ;;  %v636_v20 = vadd.f32 %v3766_v39, %v3415_v56  ;;  %v1131_v54 = vpack.c.bf16 %v1125_v10, %v1124_v45  ;;  %v1102_v57 = vadd.f32 %v1094_v29, %v1070_v31  ;;  %v5101_v26 = vld [vmem:[#allocation3_spill] sm:$0xff] }
 0x143   : > { %v1103_v27 = vadd.f32 %v1095_v61, %v1071_v59  ;;  %v628_v50 = vadd.f32 %v3415_v56, %v3784_v42  ;;  %v693_v49 = vmax.f32 %v633_v16, 0.0  ;;  %v867_v11 = vmul.f32 %v3782_v1, %v5100_v24  ;;  %v5105_v42 = vld [vmem:[#allocation11_spill] sm:$0xff] }
 0x144   : > { %v691_v40 = vmax.f32 %v625_v36, 0.0  ;;  %v694_v37 = vmax.f32 %v636_v20, 0.0  ;;  %3129 = vmatmul.mubr.bf16.vlgmr.msra.gmra.mrb[0].mxu1 %v1131_v54  ;;  %v1110_v47 = vadd.f32 %v1102_v57, %v1015_v41  ;;  %v868_v55 = vmul.f32 %v3774_v38, %v5101_v26  ;;  %v5106_v1 = vld [vmem:[#allocation15_spill] sm:$0xff]  ;;  %v5117_v57 = vld [vmem:[#allocation18_spill] sm:$0xff] }
 0x145   : > { %v1111_v53 = vadd.f32 %v1103_v27, %v1016_v58  ;;  %v692_v15 = vmax.f32 %v628_v50, 0.0  ;;  %v3965_v39 = vmin.f32 %v693_v49, 6.0  ;;  %v875_v29 = vadd.f32 %v867_v11, %v5105_v42 }
 0x146   : > { %v3967_v45 = vmin.f32 %v691_v40, 6.0  ;;  %v3969_v34 = vmin.f32 %v694_v37, 6.0  ;;  %v1118_v61 = vmax.f32 %v1110_v47, 0.0  ;;  %v876_v59 = vadd.f32 %v868_v55, %v5106_v1  ;;  %v5116_v1 = vld [vmem:[#allocation7_spill] sm:$0xff]  ;;  %v5118_v55 = vld [vmem:[#allocation9_spill] sm:$0xff] }
 0x147   : > { %5102 = vst [vmem:[#allocation12_spill] sm:$0xff] %v3965_v39  ;;  %v1119_v10 = vmax.f32 %v1111_v53, 0.0  ;;  %v3972_v31 = vmin.f32 %v692_v15, 6.0  ;;  %v3977_v50 = vmul.f32 %v3429_v4, %v3965_v39  ;;  %v3983_v58 = vmul.f32 %v3396_v46, %v3965_v39  ;;  %v5119_v15 = vld [vmem:[#allocation13_spill] sm:$0xff]  ;;  %v5139_v39 = vld [vmem:[#allocation14_spill] sm:$0xff] }
 0x148   : > { %5103 = vst [vmem:[#allocation16_spill] sm:$0xff] %v3967_v45  ;;  %5104 = vst [vmem:[#allocation5_spill] sm:$0xff] %v3969_v34  ;;  %v1126_v16 = vmin.f32 %v1118_v61, 6.0  ;;  %v3987_v20 = vmul.f32 %v3396_v46, %v3967_v45  ;;  %v3993_v27 = vmul.f32 %v3429_v4, %v3967_v45  ;;  %v3997_v49 = vmul.f32 %v3429_v4, %v3969_v34  ;;  %v5115_v61 = vld [vmem:[#allocation4_spill] sm:$0xff] }
 0x149   : > { %5107 = vst [vmem:[#allocation3_spill] sm:$0xff] %v3977_v50  ;;  %5108 = vst [vmem:[#allocation11_spill] sm:$0xff] %v3983_v58  ;;  %v1127_v36 = vmin.f32 %v1119_v10, 6.0  ;;  %v4003_v47 = vmul.f32 %v3396_v46, %v3969_v34  ;;  %v4007_v53 = vmul.f32 %v3396_v46, %v3972_v31  ;;  %v4013_v42 = vmul.f32 %v3429_v4, %v3972_v31 }
 0x14a   : > { %5109 = vst [vmem:[#allocation15_spill] sm:$0xff] %v3987_v20  ;;  %5110 = vst [vmem:[#allocation47_spill] sm:$0xff] %v3993_v27  ;;  %v900_v10 = vmul.f32 %v3796_v32, %v5115_v61  ;;  %v970_v41 = vmul.f32 %v3895_v44, %v3422_v63  ;;  %v1001_v11 = vmul.f32 %v3921_v28, %v3427_v3  ;;  %v5120_v58 = vrot.slane %v3659_v62, 7 }
 0x14b   : > { %5111 = vst [vmem:[#allocation48_spill] sm:$0xff] %v3997_v49  ;;  %v1132_v37 = vpack.c.bf16 %v1127_v36, %v1126_v16  ;;  %5112 = vst [vmem:[#allocation49_spill] sm:$0xff] %v4003_v47  ;;  %v901_v16 = vmul.f32 %v3858_v51, %v5116_v1  ;;  %v969_v36 = vmul.f32 %v3907_v5, %v3448_v17  ;;  %v5121_v49 = vrot.slane %v5117_v57, 7 }
 0x14c   : > { %5113 = vst [vmem:[#allocation50_spill] sm:$0xff] %v4007_v53  ;;  %5114 = vst [vmem:[#allocation51_spill] sm:$0xff] %v4013_v42  ;;  %v908_v38 = vadd.f32 %v900_v10, %v875_v29  ;;  %v1002_v40 = vmul.f32 %v3933_v60, %v3456_v21  ;;  %v1040_v32 = vmul.f32 %v3439_v13, %v5117_v57  ;;  %v5123_v53 = vmov %v5120_v58 }
 0x14d   : > { %3132 = vmatprep.mubr.bf16.mxu1 %v1132_v37  ;;  %v1041_v37 = vmul.f32 %v3439_v13, %v3659_v62  ;;  %v909_v51 = vadd.f32 %v901_v16, %v876_v59  ;;  %v977_v54 = vadd.f32 %v969_v36, %v5118_v55  ;;  %v978_v47 = vadd.f32 %v970_v41, %v5119_v15 }
 0x14e   : > { %v4039_v29 = vsel %vm852_vm2, %v5121_v49, %v5120_v58  ;;  %v922_v10 = vadd.f32 %v3444_v14, %v908_v38  ;;  %v5122_v50 = vmov %v5121_v49  ;;  %v5124_v15 = vrot.slane %v3659_v62, 1 }
 0x14f   : > { %v4048_v59 = vsel %vm852_vm2, %v5123_v53, %v5122_v50  ;;  %v1065_v41 = vmul.f32 %v4039_v29, %v3424_v0  ;;  %v5125_v55 = vrot.slane %v5117_v57, 1  ;;  %v923_v38 = vadd.f32 %v3444_v14, %v909_v51  ;;  %v5130_v51 = vld [vmem:[#allocation17_spill] sm:$0xff] }
 0x150   : > { %v1009_v49 = vadd.f32 %v1001_v11, %v977_v54  ;;  %v1010_v16 = vadd.f32 %v1002_v40, %v978_v47  ;;  %v1064_v36 = vmul.f32 %v4048_v59, %v3451_v18  ;;  %v5127_v20 = vmov %v5124_v15 }
 0x151   : > { %v4058_v58 = vsel %vm885_vm3, %v5125_v55, %v5124_v15  ;;  %v1073_v50 = vadd.f32 %v1065_v41, %v1041_v37  ;;  %v5126_v53 = vmov %v5125_v55  ;;  %v5128_v55 = vld [vmem:[#allocation19_spill] sm:$0xff]  ;;  %v5131_v54 = vrot.slane %v5130_v51, 7 }
 0x152   : > { %v4069_v42 = vsel %vm885_vm3, %v5127_v20, %v5126_v53  ;;  %v1096_v15 = vmul.f32 %v3435_v7, %v4058_v58  ;;  %v5129_v27 = vrot.slane %v5128_v55, 7  ;;  %v1017_v11 = vadd.f32 %v1009_v49, %v922_v10 }
 0x153   : > { %v1018_v47 = vadd.f32 %v1010_v16, %v923_v38  ;;  %v1072_v57 = vadd.f32 %v1064_v36, %v1040_v32  ;;  %v1097_v62 = vmul.f32 %v4069_v42, %v3459_v22  ;;  %v5132_v20 = vmov %v5131_v54 }
 0x154   : > { %v4079_v40 = vsel %vm852_vm2, %v5131_v54, %v5129_v27  ;;  %v5133_v37 = vmov %v5129_v27  ;;  %v1169_v53 = vmul.f32 %v3907_v5, %v5100_v24  ;;  %v1170_v27 = vmul.f32 %v3895_v44, %v5101_v26 }
 0x155   : > { %v4089_v41 = vsel %vm852_vm2, %v5133_v37, %v5132_v20  ;;  %v5134_v10 = vrot.slane %v5128_v55, 1  ;;  %v5135_v32 = vrot.slane %v5130_v51, 1  ;;  %v1104_v49 = vadd.f32 %v1096_v15, %v1072_v57  ;;  %v5138_v20 = vld [vmem:[#allocation10_spill] sm:$0xff] }
 0x156   : > { %v1105_v16 = vadd.f32 %v1097_v62, %v1073_v50  ;;  %v1201_v44 = vmul.f32 %v3921_v28, %v5115_v61  ;;  %v1177_v37 = vadd.f32 %v1169_v53, %v5138_v20  ;;  %v1178_v34 = vadd.f32 %v1170_v27, %v5139_v39  ;;  %v5141_v20 = vld [vmem:[#allocation27_spill] sm:$0xff] }
 0x157   : > { %v4101_v38 = vsel %vm885_vm3, %v5135_v32, %v5134_v10  ;;  %v5136_v36 = vmov %v5135_v32  ;;  %v5137_v54 = vmov %v5134_v10  ;;  %v1202_v10 = vmul.f32 %v3933_v60, %v5116_v1 }
 0x158   : > { %v4109_v5 = vsel %vm885_vm3, %v5137_v54, %v5136_v36  ;;  %v1260_v50 = vmul.f32 %v4048_v59, %v3448_v17  ;;  %v1112_v15 = vadd.f32 %v1104_v49, %v1017_v11  ;;  %v1113_v57 = vadd.f32 %v1105_v16, %v1018_v47  ;;  %v5140_v54 = vld [vmem:[#allocation23_spill] sm:$0xff] }
 0x159   : > { %v1261_v62 = vmul.f32 %v4039_v29, %v3422_v63  ;;  %v1292_v32 = vmul.f32 %v4058_v58, %v3427_v3  ;;  %v1209_v36 = vadd.f32 %v1201_v44, %v1177_v37  ;;  %v1210_v28 = vadd.f32 %v1202_v10, %v1178_v34 }
 0x15a   : > { %v1268_v53 = vadd.f32 %v1260_v50, %v5140_v54  ;;  %v1293_v39 = vmul.f32 %v4069_v42, %v3456_v21  ;;  %v1120_v27 = vmax.f32 %v1112_v15, 0.0  ;;  %v1121_v60 = vmax.f32 %v1113_v57, 0.0 }
 0x15b   : > { %v1269_v45 = vadd.f32 %v1261_v62, %v5141_v20  ;;  %v1327_v11 = vmul.f32 %v3439_v13, %v5130_v51  ;;  %v1217_v47 = vadd.f32 %v3444_v14, %v1209_v36  ;;  %v1218_v49 = vadd.f32 %v3444_v14, %v1210_v28  ;;  %v5142_v20 = vld [vmem:[#allocation33_spill] sm:$0xff] }
 0x15c   : > { %v1300_v16 = vadd.f32 %v1292_v32, %v1268_v53  ;;  %v1328_v34 = vmul.f32 %v3439_v13, %v5128_v55  ;;  %v1128_v44 = vmin.f32 %v1120_v27, 6.0  ;;  %v1129_v37 = vmin.f32 %v1121_v60, 6.0 }
 0x15d   : > { %v1301_v10 = vadd.f32 %v1293_v39, %v1269_v45  ;;  %v1351_v50 = vmul.f32 %v4089_v41, %v3451_v18  ;;  %v1352_v57 = vmul.f32 %v4079_v40, %v3424_v0  ;;  %v1383_v51 = vmul.f32 %v3435_v7, %v4101_v38 }
 0x15e   : > { %v1308_v15 = vadd.f32 %v1300_v16, %v1217_v47  ;;  %v1384_v62 = vmul.f32 %v4109_v5, %v3459_v22  ;;  %v1133_v32 = vpack.c.bf16 %v1129_v37, %v1128_v44  ;;  %v649_v55 = vadd.f32 %v3816_v48, %v3415_v56 }
 0x15f   : > { %v1309_v36 = vadd.f32 %v1301_v10, %v1218_v49  ;;  %v1359_v28 = vadd.f32 %v1351_v50, %v1327_v11  ;;  %v1360_v45 = vadd.f32 %v1352_v57, %v1328_v34  ;;  %v641_v54 = vadd.f32 %v3415_v56, %v3830_v19  ;;  %v5144_v49 = vld [vmem:[#allocation31_spill] sm:$0xff] }
 0x160   : > { %v652_v53 = vadd.f32 %v3838_v12, %v3415_v56  ;;  %v644_v39 = vadd.f32 %v3415_v56, %v3846_v30  ;;  %3133 = vmatmul.mubr.bf16.gmra.mrb[4].mxu1 %v1133_v32  ;;  %v697_v60 = vmax.f32 %v649_v55, 0.0  ;;  %v5143_v47 = vrot.slane %v5142_v20, 7 }
 0x161   : > { %v1391_v27 = vadd.f32 %v1383_v51, %v1359_v28  ;;  %v5145_v11 = vrot.slane %v5144_v49, 7  ;;  %v1392_v56 = vadd.f32 %v1384_v62, %v1360_v45  ;;  %v695_v30 = vmax.f32 %v641_v54, 0.0  ;;  %v5155_v54 = vld [vmem:[#allocation26_spill] sm:$0xff] }
 0x162   : > { %v5147_v19 = vmov %v5143_v47  ;;  %v698_v34 = vmax.f32 %v652_v53, 0.0  ;;  %v696_v44 = vmax.f32 %v644_v39, 0.0  ;;  %v4165_v10 = vmin.f32 %v697_v60, 6.0 }
 0x163   : > { %v4155_v48 = vsel %vm852_vm2, %v5145_v11, %v5143_v47  ;;  %v5146_v16 = vmov %v5145_v11  ;;  %v1399_v37 = vadd.f32 %v1391_v27, %v1308_v15  ;;  %v1171_v50 = vmul.f32 %v4048_v59, %v5100_v24 }
 0x164   : > { %v4163_v12 = vsel %vm852_vm2, %v5147_v19, %v5146_v16  ;;  %v1172_v57 = vmul.f32 %v4039_v29, %v5101_v26  ;;  %v1400_v51 = vadd.f32 %v1392_v56, %v1309_v36  ;;  %v4171_v32 = vmin.f32 %v695_v30, 6.0 }
 0x165   : > { %v4173_v28 = vmin.f32 %v698_v34, 6.0  ;;  %v4175_v55 = vmin.f32 %v696_v44, 6.0  ;;  %v1407_v62 = vmax.f32 %v1399_v37, 0.0  ;;  %v4179_v45 = vmul.f32 %v3396_v46, %v4165_v10 }
 0x166   : > { %v1408_v59 = vmax.f32 %v1400_v51, 0.0  ;;  %v4185_v29 = vmul.f32 %v3429_v4, %v4165_v10  ;;  %v4191_v27 = vmul.f32 %v3396_v46, %v4171_v32  ;;  %v4195_v60 = vmul.f32 %v3429_v4, %v4171_v32 }
 0x167   : > { %5148 = vst [vmem:[#allocation4_spill] sm:$0xff] %v4179_v45  ;;  %v1415_v39 = vmin.f32 %v1407_v62, 6.0  ;;  %v4199_v47 = vmul.f32 %v3396_v46, %v4173_v28  ;;  %v4205_v56 = vmul.f32 %v3429_v4, %v4173_v28  ;;  %v4211_v44 = vmul.f32 %v3396_v46, %v4175_v55  ;;  %v5154_v62 = vld [vmem:[#allocation22_spill] sm:$0xff] }
 0x168   : > { %5149 = vst [vmem:[#allocation7_spill] sm:$0xff] %v4185_v29  ;;  %5150 = vst [vmem:[#allocation18_spill] sm:$0xff] %v4191_v27  ;;  %v1416_v11 = vmin.f32 %v1408_v59, 6.0  ;;  %v4215_v37 = vmul.f32 %v3429_v4, %v4175_v55  ;;  %v1179_v59 = vadd.f32 %v1171_v50, %v5154_v62  ;;  %v1180_v19 = vadd.f32 %v1172_v57, %v5155_v54  ;;  %v5162_v27 = vld [vmem:[#allocation20_spill] sm:$0xff] }
 0x169   : > { %5151 = vst [vmem:[#allocation9_spill] sm:$0xff] %v4199_v47  ;;  %5152 = vst [vmem:[#allocation13_spill] sm:$0xff] %v4205_v56  ;;  %v5156_v15 = vrot.slane %v5142_v20, 1  ;;  %v5157_v16 = vrot.slane %v5144_v49, 1  ;;  %v1203_v50 = vmul.f32 %v4058_v58, %v5115_v61  ;;  %v1204_v57 = vmul.f32 %v4069_v42, %v5116_v1 }
 0x16a   : > { %5153 = vst [vmem:[#allocation19_spill] sm:$0xff] %v4211_v44  ;;  %v1423_v51 = vpack.c.bf16 %v1416_v11, %v1415_v39  ;;  %v1262_v54 = vmul.f32 %v4089_v41, %v3448_v17  ;;  %v1294_v39 = vmul.f32 %v4101_v38, %v3427_v3  ;;  %v1329_v11 = vmul.f32 %v3439_v13, %v5144_v49 }
 0x16b   : > { %v4225_v53 = vsel %vm885_vm3, %v5157_v16, %v5156_v15  ;;  %v5158_v34 = vmov %v5157_v16  ;;  %v5159_v36 = vmov %v5156_v15  ;;  %v1263_v15 = vmul.f32 %v4079_v40, %v3422_v63 }
 0x16c   : > { %v4233_v30 = vsel %vm885_vm3, %v5159_v36, %v5158_v34  ;;  %3136 = vmatprep.mubr.bf16.mxu1 %v1423_v51  ;;  %v1295_v36 = vmul.f32 %v4109_v5, %v3456_v21  ;;  %v1211_v58 = vadd.f32 %v1203_v50, %v1179_v59  ;;  %v1212_v16 = vadd.f32 %v1204_v57, %v1180_v19  ;;  %v5160_v34 = vld [vmem:[#allocation21_spill] sm:$0xff] }
 0x16d   : > { %v1270_v42 = vadd.f32 %v1262_v54, %v5160_v34  ;;  %v1330_v62 = vmul.f32 %v3439_v13, %v5142_v20  ;;  %v5161_v51 = vld [vmem:[#allocation25_spill] sm:$0xff]  ;;  %v1353_v45 = vmul.f32 %v4163_v12, %v3451_v18  ;;  %v1354_v56 = vmul.f32 %v4155_v48, %v3424_v0 }
 0x16e   : > { %v1271_v47 = vadd.f32 %v1263_v15, %v5161_v51  ;;  %v1385_v29 = vmul.f32 %v3435_v7, %v4225_v53  ;;  %v1219_v49 = vadd.f32 %v3444_v14, %v1211_v58  ;;  %v1220_v19 = vadd.f32 %v3444_v14, %v1212_v16 }
 0x16f   : > { %v1302_v59 = vadd.f32 %v1294_v39, %v1270_v42  ;;  %v1386_v50 = vmul.f32 %v4233_v30, %v3459_v22  ;;  %v1361_v57 = vadd.f32 %v1353_v45, %v1329_v11  ;;  %v1362_v54 = vadd.f32 %v1354_v56, %v1330_v62  ;;  %v5163_v45 = vld [vmem:[#allocation24_spill] sm:$0xff] }
 0x170   : > { %v1303_v20 = vadd.f32 %v1295_v36, %v1271_v47  ;;  %v1173_v15 = vmul.f32 %v4089_v41, %v5100_v24  ;;  %v1174_v51 = vmul.f32 %v4079_v40, %v5101_v26  ;;  %v1205_v44 = vmul.f32 %v4101_v38, %v5115_v61  ;;  %v5164_v36 = vld [vmem:[#allocation32_spill] sm:$0xff] }
 0x171   : > { %v1310_v34 = vadd.f32 %v1302_v59, %v1219_v49  ;;  %v1206_v58 = vmul.f32 %v4109_v5, %v5116_v1  ;;  %v1393_v16 = vadd.f32 %v1385_v29, %v1361_v57  ;;  %v1394_v42 = vadd.f32 %v1386_v50, %v1362_v54  ;;  %v5166_v41 = vld [vmem:[#allocation28_spill] sm:$0xff]  ;;  %v5170_v57 = vld [vmem:[#allocation35_spill] sm:$0xff] }
 0x172   : > { %v1311_v39 = vadd.f32 %v1303_v20, %v1220_v19  ;;  %v1181_v47 = vadd.f32 %v1173_v15, %v5162_v27  ;;  %v1182_v56 = vadd.f32 %v1174_v51, %v5163_v45  ;;  %v5165_v11 = vrot.slane %v5164_v36, 7 }
 0x173   : > { %v5167_v62 = vrot.slane %v5166_v41, 7  ;;  %v1264_v29 = vmul.f32 %v4163_v12, %v3448_v17  ;;  %v1401_v27 = vadd.f32 %v1393_v16, %v1310_v34  ;;  %v1265_v50 = vmul.f32 %v4155_v48, %v3422_v63 }
 0x174   : > { %v5169_v49 = vmov %v5165_v11  ;;  %v1402_v19 = vadd.f32 %v1394_v42, %v1311_v39  ;;  %v1213_v59 = vadd.f32 %v1205_v44, %v1181_v47  ;;  %v1214_v20 = vadd.f32 %v1206_v58, %v1182_v56  ;;  %v5175_v42 = vld [vmem:[#allocation39_spill] sm:$0xff] }
 0x175   : > { %v4279_v40 = vsel %vm852_vm2, %v5167_v62, %v5165_v11  ;;  %v5168_v38 = vmov %v5167_v62  ;;  %v1272_v54 = vadd.f32 %v1264_v29, %v5170_v57  ;;  %v5171_v15 = vrot.slane %v5164_v36, 1 }
 0x176   : > { %v4287_v5 = vsel %vm852_vm2, %v5169_v49, %v5168_v38  ;;  %v5172_v51 = vrot.slane %v5166_v41, 1  ;;  %v1409_v39 = vmax.f32 %v1401_v27, 0.0  ;;  %v1410_v58 = vmax.f32 %v1402_v19, 0.0 }
 0x177   : > { %v5174_v34 = vmov %v5171_v15  ;;  %v1221_v16 = vadd.f32 %v3444_v14, %v1213_v59  ;;  %v1273_v47 = vadd.f32 %v1265_v50, %v5175_v42  ;;  %v1222_v56 = vadd.f32 %v3444_v14, %v1214_v20 }
 0x178   : > { %v4300_v45 = vsel %vm885_vm3, %v5172_v51, %v5171_v15  ;;  %v5173_v11 = vmov %v5172_v51  ;;  %v1296_v62 = vmul.f32 %v4225_v53, %v3427_v3  ;;  %v1297_v38 = vmul.f32 %v4233_v30, %v3456_v21 }
 0x179   : > { %v4308_v44 = vsel %vm885_vm3, %v5174_v34, %v5173_v11  ;;  %v1331_v49 = vmul.f32 %v3439_v13, %v5166_v41  ;;  %v1417_v29 = vmin.f32 %v1409_v39, 6.0  ;;  %v1418_v57 = vmin.f32 %v1410_v58, 6.0 }
 0x17a   : > { %v1332_v27 = vmul.f32 %v3439_v13, %v5164_v36  ;;  %v1355_v19 = vmul.f32 %v4287_v5, %v3451_v18  ;;  %v1304_v59 = vadd.f32 %v1296_v62, %v1272_v54  ;;  %v1305_v50 = vadd.f32 %v1297_v38, %v1273_v47  ;;  %v3217_v36 = vld [vmem:[%s4996_s2] ss:$0 sm:$0xff] }
 0x17b   : > { %v1356_v14 = vmul.f32 %v4279_v40, %v3424_v0  ;;  %v1387_v20 = vmul.f32 %v3435_v7, %v4300_v45  ;;  %v1424_v15 = vpack.c.bf16 %v1418_v57, %v1417_v29  ;;  %v1388_v41 = vmul.f32 %v4308_v44, %v3459_v22 }
 0x17c   : > { %v1363_v51 = vadd.f32 %v1355_v19, %v1331_v49  ;;  %v665_v11 = vadd.f32 %v3217_v36, %v3887_v23  ;;  %v1312_v34 = vadd.f32 %v1304_v59, %v1221_v16  ;;  %v1313_v54 = vadd.f32 %v1305_v50, %v1222_v56  ;;  %v5176_v59 = vld [vmem:[#allocation34_spill] sm:$0xff] }
 0x17d   : > { %v1364_v39 = vadd.f32 %v1356_v14, %v1332_v27  ;;  %v657_v58 = vadd.f32 %v3217_v36, %v3897_v8  ;;  %3137 = vmatmul.mubr.bf16.gmra.mrb[8].mxu1 %v1424_v15  ;;  %v668_v7 = vadd.f32 %v3217_v36, %v3909_v25  ;;  %v660_v62 = vadd.f32 %v3217_v36, %v3923_v52  ;;  %v5177_v50 = vld [vmem:[#allocation38_spill] sm:$0xff] }
 0x17e   : > { %v1395_v42 = vadd.f32 %v1387_v20, %v1363_v51  ;;  %v701_v47 = vmax.f32 %v665_v11, 0.0  ;;  %v1175_v29 = vmul.f32 %v4163_v12, %v5100_v24  ;;  %v1176_v23 = vmul.f32 %v4155_v48, %v5101_v26  ;;  %v5185_v48 = vld [vmem:[#allocation36_spill] sm:$0xff] }
 0x17f   : > { %v1396_v38 = vadd.f32 %v1388_v41, %v1364_v39  ;;  %v699_v49 = vmax.f32 %v657_v58, 0.0  ;;  %v702_v57 = vmax.f32 %v668_v7, 0.0  ;;  %v700_v8 = vmax.f32 %v660_v62, 0.0 }
 0x180   : > { %v1403_v16 = vadd.f32 %v1395_v42, %v1312_v34  ;;  %v4340_v56 = vmin.f32 %v701_v47, 6.0  ;;  %v1183_v25 = vadd.f32 %v1175_v29, %v5176_v59  ;;  %v1184_v52 = vadd.f32 %v1176_v23, %v5177_v50 }
 0x181   : > { %v1404_v27 = vadd.f32 %v1396_v38, %v1313_v54  ;;  %v4342_v19 = vmin.f32 %v699_v49, 6.0  ;;  %v4366_v39 = vmin.f32 %v702_v57, 6.0  ;;  %v4368_v42 = vmin.f32 %v700_v8, 6.0 }
 0x182   : > { %v1411_v14 = vmax.f32 %v1403_v16, 0.0  ;;  %v4348_v20 = vmul.f32 %v3429_v4, %v4340_v56  ;;  %v5036_v12 = vrot.slane %v4340_v56, 7  ;;  %v4354_v51 = vmul.f32 %v3439_v13, %v4340_v56 }
 0x183   : > { %v1412_v15 = vmax.f32 %v1404_v27, 0.0  ;;  %v4358_v41 = vmul.f32 %v3396_v46, %v4342_v19  ;;  %v4364_v54 = vmul.f32 %v3429_v4, %v4342_v19  ;;  %v1207_v47 = vmul.f32 %v4225_v53, %v5115_v61  ;;  %v4458_v53 = vld [vmem:[%s4997_s3 + $0x8] ss:$0 sm:$0xff] }
 0x184   : > { %5178 = vst [vmem:[#allocation17_spill] sm:$0xff] %v4348_v20  ;;  %5179 = vst [vmem:[#allocation10_spill] sm:$0xff] %v4354_v51  ;;  %v1419_v11 = vmin.f32 %v1411_v14, 6.0  ;;  %v1208_v7 = vmul.f32 %v4233_v30, %v5116_v1  ;;  %v1829_v62 = vmul.f32 %v3429_v4, %v4366_v39  ;;  %v5035_v38 = vrot.slane %v4366_v39, 7 }
 0x185   : > { %5180 = vst [vmem:[#allocation14_spill] sm:$0xff] %v4358_v41  ;;  %v1420_v58 = vmin.f32 %v1412_v15, 6.0  ;;  %v4380_v29 = vmul.f32 %v3439_v13, %v4366_v39  ;;  %v4384_v16 = vmul.f32 %v3396_v46, %v4368_v42  ;;  %v4398_v8 = vmul.f32 %v3429_v4, %v4368_v42  ;;  %v4411_v4 = vld [vmem:[%s4998_s4] ss:$0 sm:$0xff] }
 0x186   : > { %v4394_v57 = vsel %vm852_vm2, %v5036_v12, %v5035_v38  ;;  %v1215_v27 = vadd.f32 %v1207_v47, %v1183_v25  ;;  %v1216_v59 = vadd.f32 %v1208_v7, %v1184_v52  ;;  %v1266_v50 = vmul.f32 %v4287_v5, %v3448_v17  ;;  %v5184_v7 = vld [vmem:[#allocation29_spill] sm:$0xff] }
 0x187   : > { %5181 = vst [vmem:[#allocation23_spill] sm:$0xff] %v4380_v29  ;;  %v1425_v23 = vpack.c.bf16 %v1420_v58, %v1419_v11  ;;  %5182 = vst [vmem:[#allocation27_spill] sm:$0xff] %v4384_v16  ;;  %v1853_v46 = vmul.f32 %v4394_v57, %v3422_v63  ;;  %v1267_v14 = vmul.f32 %v4279_v40, %v3422_v63  ;;  %v5186_v12 = vrot.slane %v3802_v6, 7 }
 0x188   : > { %v1298_v15 = vmul.f32 %v4300_v45, %v3427_v3  ;;  %v1223_v25 = vadd.f32 %v4411_v4, %v1215_v27  ;;  %v1224_v52 = vadd.f32 %v4411_v4, %v1216_v59  ;;  %v1299_v11 = vmul.f32 %v4308_v44, %v3456_v21 }
 0x189   : > { %3140 = vmatprep.mubr.bf16.mxu1 %v1425_v23  ;;  %v1333_v58 = vmul.f32 %v3439_v13, %v3798_v43  ;;  %v4419_v47 = vadd.f32 %v1853_v46, %v1829_v62  ;;  %v1274_v23 = vadd.f32 %v1266_v50, %v5184_v7  ;;  %v1275_v49 = vadd.f32 %v1267_v14, %v5185_v48 }
 0x18a   : > { %v1334_v38 = vmul.f32 %v3439_v13, %v3802_v6  ;;  %v5187_v27 = vrot.slane %v3798_v43, 7  ;;  %v5189_v30 = vmov %v5186_v12  ;;  %v5190_v46 = vrot.slane %v3802_v6, 1 }
 0x18b   : > { %5183 = vst [vmem:[#allocation33_spill] sm:$0xff] %v4419_v47  ;;  %v5191_v48 = vrot.slane %v3798_v43, 1  ;;  %v1307_v36 = vadd.f32 %v1299_v11, %v1275_v49  ;;  %v1462_v16 = vmul.f32 %v4287_v5, %v5100_v24  ;;  %v1463_v41 = vmul.f32 %v4279_v40, %v5101_v26 }
 0x18c   : > { %v1346_v59 = vsel %vm852_vm2, %v5187_v27, %v5186_v12  ;;  %v5188_v34 = vmov %v5187_v27  ;;  %v5193_v7 = vmov %v5190_v46  ;;  %v1306_v27 = vadd.f32 %v1298_v15, %v1274_v23 }
 0x18d   : > { %v1350_v62 = vsel %vm852_vm2, %v5189_v30, %v5188_v34  ;;  %v4443_v50 = vsel %vm885_vm3, %v5191_v48, %v5190_v46  ;;  %v5192_v14 = vmov %v5191_v48  ;;  %v1358_v30 = vmul.f32 %v1346_v59, %v3424_v0 }
 0x18e   : > { %v4451_v12 = vsel %vm885_vm3, %v5193_v7, %v5192_v14  ;;  %v1357_v34 = vmul.f32 %v1350_v62, %v3451_v18  ;;  %v1389_v43 = vmul.f32 %v4458_v53, %v4443_v50  ;;  %v5194_v46 = vrot.slane %v3800_v9, 7 }
 0x18f   : > { %v1390_v6 = vmul.f32 %v4451_v12, %v3459_v22  ;;  %v5195_v15 = vrot.slane %v3786_v35, 7  ;;  %v1314_v14 = vadd.f32 %v1306_v27, %v1223_v25  ;;  %v1315_v7 = vadd.f32 %v1307_v36, %v1224_v52 }
 0x190   : > { %v5197_v23 = vmov %v5194_v46  ;;  %v1365_v47 = vadd.f32 %v1357_v34, %v1333_v58  ;;  %v1366_v20 = vadd.f32 %v1358_v30, %v1334_v38  ;;  %v1494_v40 = vmul.f32 %v4300_v45, %v5115_v61  ;;  %v5202_v58 = vld [vmem:[#allocation30_spill] sm:$0xff]  ;;  %v5203_v34 = vld [vmem:[#allocation37_spill] sm:$0xff] }
 0x191   : > { %v4470_v49 = vsel %vm852_vm2, %v5195_v15, %v5194_v46  ;;  %v5196_v11 = vmov %v5195_v15  ;;  %v5198_v46 = vrot.slane %v3800_v9, 1  ;;  %v5199_v15 = vrot.slane %v3786_v35, 1 }
 0x192   : > { %v4478_v48 = vsel %vm852_vm2, %v5197_v23, %v5196_v11  ;;  %v1397_v5 = vadd.f32 %v1389_v43, %v1365_v47  ;;  %v1398_v25 = vadd.f32 %v1390_v6, %v1366_v20  ;;  %v1495_v52 = vmul.f32 %v4308_v44, %v5116_v1  ;;  %v5204_v6 = vld [vmem:[#allocation46_spill] sm:$0xff] }
 0x193   : > { %v4490_v29 = vsel %vm885_vm3, %v5199_v15, %v5198_v46  ;;  %v5200_v11 = vmov %v5199_v15  ;;  %v5201_v36 = vmov %v5198_v46  ;;  %v1470_v27 = vadd.f32 %v1462_v16, %v5202_v58 }
 0x194   : > { %v4498_v38 = vsel %vm885_vm3, %v5201_v36, %v5200_v11  ;;  %v1471_v30 = vadd.f32 %v1463_v41, %v5203_v34  ;;  %v1553_v23 = vmul.f32 %v1350_v62, %v3448_v17  ;;  %v1554_v46 = vmul.f32 %v1346_v59, %v3422_v63 }
 0x195   : > { %v1405_v15 = vadd.f32 %v1397_v5, %v1314_v14  ;;  %v1406_v51 = vadd.f32 %v1398_v25, %v1315_v7  ;;  %v1585_v47 = vmul.f32 %v4443_v50, %v3427_v3  ;;  %v1586_v20 = vmul.f32 %v4451_v12, %v3456_v21 }
 0x196   : > { %v1502_v45 = vadd.f32 %v1494_v40, %v1470_v27  ;;  %v1503_v43 = vadd.f32 %v1495_v52, %v1471_v30  ;;  %v1561_v44 = vadd.f32 %v1553_v23, %v3824_v2  ;;  %v1562_v16 = vadd.f32 %v1554_v46, %v5204_v6 }
 0x197   : > { %v1413_v11 = vmax.f32 %v1405_v15, 0.0  ;;  %v1414_v41 = vmax.f32 %v1406_v51, 0.0  ;;  %v1620_v36 = vmul.f32 %v3439_v13, %v3786_v35  ;;  %v1621_v14 = vmul.f32 %v3439_v13, %v3800_v9 }
 0x198   : > { %v1510_v7 = vadd.f32 %v4411_v4, %v1502_v45  ;;  %v1511_v5 = vadd.f32 %v4411_v4, %v1503_v43  ;;  %v1593_v25 = vadd.f32 %v1585_v47, %v1561_v44  ;;  %v1594_v58 = vadd.f32 %v1586_v20, %v1562_v16  ;;  %v5206_v47 = vld [vmem:[#allocation16_spill] sm:$0xff] }
 0x199   : > { %v1421_v40 = vmin.f32 %v1413_v11, 6.0  ;;  %v1422_v52 = vmin.f32 %v1414_v41, 6.0  ;;  %v1644_v2 = vmul.f32 %v4478_v48, %v3451_v18  ;;  %v1645_v51 = vmul.f32 %v4470_v49, %v3424_v0 }
 0x19a   : > { %v1601_v27 = vadd.f32 %v1593_v25, %v1510_v7  ;;  %v1602_v34 = vadd.f32 %v1594_v58, %v1511_v5  ;;  %v1676_v35 = vmul.f32 %v4458_v53, %v4490_v29  ;;  %v1677_v9 = vmul.f32 %v4498_v38, %v3459_v22 }
 0x19b   : > { %v1426_v30 = vpack.c.bf16 %v1422_v52, %v1421_v40  ;;  %v1652_v23 = vadd.f32 %v1644_v2, %v1620_v36  ;;  %v1653_v46 = vadd.f32 %v1645_v51, %v1621_v14  ;;  %v5205_v15 = vrot.slane %v3972_v31, 7  ;;  %v5214_v40 = vld [vmem:[#allocation42_spill] sm:$0xff]  ;;  %v5215_v2 = vld [vmem:[#allocation45_spill] sm:$0xff] }
 0x19c   : > { %v5207_v20 = vrot.slane %v5206_v47, 7  ;;  %v1464_v16 = vmul.f32 %v1350_v62, %v5100_v24  ;;  %v1465_v11 = vmul.f32 %v1346_v59, %v5101_v26  ;;  %v5210_v41 = vrot.slane %v3972_v31, 1 }
 0x19d   : > { %v5209_v44 = vmov %v5205_v15  ;;  %v5211_v36 = vrot.slane %v5206_v47, 1  ;;  %3141 = vmatmul.mubr.bf16.gmra.mrb[12].mxu1 %v1426_v30  ;;  %v1684_v7 = vadd.f32 %v1676_v35, %v1652_v23  ;;  %v1685_v5 = vadd.f32 %v1677_v9, %v1653_v46 }
 0x19e   : > { %v4534_v45 = vsel %vm852_vm2, %v5207_v20, %v5205_v15  ;;  %v5208_v43 = vmov %v5207_v20  ;;  %v5213_v58 = vmov %v5210_v41  ;;  %v1496_v59 = vmul.f32 %v4443_v50, %v5115_v61 }
 0x19f   : > { %v4542_v6 = vsel %vm852_vm2, %v5209_v44, %v5208_v43  ;;  %v4552_v14 = vsel %vm885_vm3, %v5211_v36, %v5210_v41  ;;  %v5212_v25 = vmov %v5211_v36  ;;  %v1472_v52 = vadd.f32 %v1464_v16, %v5214_v40  ;;  %v5216_v43 = vld [vmem:[#allocation41_spill] sm:$0xff]  ;;  %v5217_v41 = vld [vmem:[#allocation44_spill] sm:$0xff] }
 0x1a0   : > { %v4560_v62 = vsel %vm885_vm3, %v5213_v58, %v5212_v25  ;;  %v1473_v51 = vadd.f32 %v1465_v11, %v5215_v2  ;;  %v1497_v30 = vmul.f32 %v4451_v12, %v5116_v1  ;;  %v1555_v35 = vmul.f32 %v4478_v48, %v3448_v17 }
 0x1a1   : > { %v1692_v9 = vadd.f32 %v1684_v7, %v1601_v27  ;;  %v1693_v23 = vadd.f32 %v1685_v5, %v1602_v34  ;;  %v1556_v46 = vmul.f32 %v4470_v49, %v3422_v63  ;;  %v1587_v15 = vmul.f32 %v4490_v29, %v3427_v3 }
 0x1a2   : > { %v1504_v20 = vadd.f32 %v1496_v59, %v1472_v52  ;;  %v1505_v50 = vadd.f32 %v1497_v30, %v1473_v51  ;;  %v1563_v44 = vadd.f32 %v1555_v35, %v5216_v43  ;;  %v1588_v16 = vmul.f32 %v4498_v38, %v3456_v21 }
 0x1a3   : > { %v1700_v11 = vmax.f32 %v1692_v9, 0.0  ;;  %v1701_v12 = vmax.f32 %v1693_v23, 0.0  ;;  %v1564_v36 = vadd.f32 %v1556_v46, %v5217_v41  ;;  %v1622_v27 = vmul.f32 %v3439_v13, %v5206_v47  ;;  %v5221_v41 = vld [vmem:[#allocation12_spill] sm:$0xff] }
 0x1a4   : > { %v1512_v34 = vadd.f32 %v4411_v4, %v1504_v20  ;;  %v1513_v7 = vadd.f32 %v4411_v4, %v1505_v50  ;;  %v1595_v5 = vadd.f32 %v1587_v15, %v1563_v44  ;;  %v1623_v25 = vmul.f32 %v3439_v13, %v3972_v31  ;;  %v5218_v44 = vld [vmem:[#allocation40_spill] sm:$0xff] }
 0x1a5   : > { %v1708_v58 = vmin.f32 %v1700_v11, 6.0  ;;  %v1709_v59 = vmin.f32 %v1701_v12, 6.0  ;;  %v1596_v40 = vadd.f32 %v1588_v16, %v1564_v36  ;;  %v1646_v52 = vmul.f32 %v4542_v6, %v3451_v18  ;;  %v5219_v11 = vld [vmem:[#allocation5_spill] sm:$0xff] }
 0x1a6   : > { %v1603_v2 = vadd.f32 %v1595_v5, %v1512_v34  ;;  %v1647_v51 = vmul.f32 %v4534_v45, %v3424_v0  ;;  %v1678_v47 = vmul.f32 %v4458_v53, %v4552_v14  ;;  %v1679_v30 = vmul.f32 %v4560_v62, %v3459_v22  ;;  %v5225_v34 = vld [vmem:[#allocation43_spill] sm:$0xff] }
 0x1a7   : > { %v1716_v35 = vpack.c.bf16 %v1709_v59, %v1708_v58  ;;  %v1604_v9 = vadd.f32 %v1596_v40, %v1513_v7  ;;  %v1654_v23 = vadd.f32 %v1646_v52, %v1622_v27  ;;  %v1466_v31 = vmul.f32 %v4478_v48, %v5100_v24 }
 0x1a8   : > { %v1655_v46 = vadd.f32 %v1647_v51, %v1623_v25  ;;  %v1467_v15 = vmul.f32 %v4470_v49, %v5101_v26  ;;  %v1498_v20 = vmul.f32 %v4490_v29, %v5115_v61  ;;  %v1499_v50 = vmul.f32 %v4498_v38, %v5116_v1 }
 0x1a9   : > { %3144 = vmatprep.mubr.bf16.mxu1 %v1716_v35  ;;  %v1686_v43 = vadd.f32 %v1678_v47, %v1654_v23  ;;  %v1474_v16 = vadd.f32 %v1466_v31, %v5218_v44  ;;  %v5220_v12 = vrot.slane %v5219_v11, 7  ;;  %v5222_v36 = vrot.slane %v5221_v41, 7 }
 0x1aa   : > { %v1687_v38 = vadd.f32 %v1679_v30, %v1655_v46  ;;  %v1475_v7 = vadd.f32 %v1467_v15, %v5225_v34  ;;  %v1557_v5 = vmul.f32 %v4542_v6, %v3448_v17  ;;  %v1558_v25 = vmul.f32 %v4534_v45, %v3422_v63  ;;  %v5231_v15 = vld [vmem:[#allocation51_spill] sm:$0xff] }
 0x1ab   : > { %v4607_v48 = vsel %vm852_vm2, %v5222_v36, %v5220_v12  ;;  %v5223_v49 = vmov %v5222_v36  ;;  %v5224_v27 = vmov %v5220_v12  ;;  %v1694_v58 = vadd.f32 %v1686_v43, %v1603_v2  ;;  %v5230_v2 = vld [vmem:[#allocation47_spill] sm:$0xff] }
 0x1ac   : > { %v4615_v29 = vsel %vm852_vm2, %v5224_v27, %v5223_v49  ;;  %v1506_v59 = vadd.f32 %v1498_v20, %v1474_v16  ;;  %v5226_v40 = vrot.slane %v5219_v11, 1  ;;  %v5227_v52 = vrot.slane %v5221_v41, 1 }
 0x1ad   : > { %v1695_v23 = vadd.f32 %v1687_v38, %v1604_v9  ;;  %v1507_v31 = vadd.f32 %v1499_v50, %v1475_v7  ;;  %v1565_v46 = vadd.f32 %v1557_v5, %v5230_v2  ;;  %v1566_v20 = vadd.f32 %v1558_v25, %v5231_v15 }
 0x1ae   : > { %v4628_v51 = vsel %vm885_vm3, %v5227_v52, %v5226_v40  ;;  %v5228_v47 = vmov %v5227_v52  ;;  %v5229_v30 = vmov %v5226_v40  ;;  %v1702_v43 = vmax.f32 %v1694_v58, 0.0 }
 0x1af   : > { %v4636_v35 = vsel %vm885_vm3, %v5229_v30, %v5228_v47  ;;  %v1514_v44 = vadd.f32 %v4411_v4, %v1506_v59  ;;  %v1589_v16 = vmul.f32 %v4552_v14, %v3427_v3  ;;  %v1590_v12 = vmul.f32 %v4560_v62, %v3456_v21 }
 0x1b0   : > { %v1703_v36 = vmax.f32 %v1695_v23, 0.0  ;;  %v1515_v49 = vadd.f32 %v4411_v4, %v1507_v31  ;;  %v1624_v9 = vmul.f32 %v3439_v13, %v5221_v41  ;;  %v1625_v50 = vmul.f32 %v3439_v13, %v5219_v11 }
 0x1b1   : > { %v1710_v27 = vmin.f32 %v1702_v43, 6.0  ;;  %v1597_v38 = vadd.f32 %v1589_v16, %v1565_v46  ;;  %v1598_v34 = vadd.f32 %v1590_v12, %v1566_v20  ;;  %v1648_v7 = vmul.f32 %v4615_v29, %v3451_v18  ;;  %v5232_v46 = vld [vmem:[#allocation15_spill] sm:$0xff] }
 0x1b2   : > { %v1711_v5 = vmin.f32 %v1703_v36, 6.0  ;;  %v1649_v25 = vmul.f32 %v4607_v48, %v3424_v0  ;;  %v1680_v58 = vmul.f32 %v4458_v53, %v4628_v51  ;;  %v1681_v59 = vmul.f32 %v4636_v35, %v3459_v22 }
 0x1b3   : > { %v1605_v41 = vadd.f32 %v1597_v38, %v1514_v44  ;;  %v1606_v40 = vadd.f32 %v1598_v34, %v1515_v49  ;;  %v1656_v52 = vadd.f32 %v1648_v7, %v1624_v9  ;;  %v1468_v11 = vmul.f32 %v4542_v6, %v5100_v24  ;;  %v5233_v6 = vld [vmem:[#allocation50_spill] sm:$0xff]  ;;  %v5234_v49 = vld [vmem:[#allocation3_spill] sm:$0xff]  ;;  %v5235_v38 = vld [vmem:[#allocation48_spill] sm:$0xff] }
 0x1b4   : > { %v1717_v47 = vpack.c.bf16 %v1711_v5, %v1710_v27  ;;  %v1657_v30 = vadd.f32 %v1649_v25, %v1625_v50  ;;  %v1469_v23 = vmul.f32 %v4534_v45, %v5101_v26  ;;  %v1500_v31 = vmul.f32 %v4552_v14, %v5115_v61 }
 0x1b5   : > { %v1688_v2 = vadd.f32 %v1680_v58, %v1656_v52  ;;  %v1476_v15 = vadd.f32 %v1468_v11, %v5232_v46  ;;  %v1501_v20 = vmul.f32 %v4560_v62, %v5116_v1  ;;  %v1559_v43 = vmul.f32 %v4615_v29, %v3448_v17 }
 0x1b6   : > { %3145 = vmatmul.mubr.bf16.gmra.mrb[16].mxu1 %v1717_v47  ;;  %v1689_v44 = vadd.f32 %v1681_v59, %v1657_v30  ;;  %v1477_v16 = vadd.f32 %v1469_v23, %v5233_v6  ;;  %v1560_v12 = vmul.f32 %v4607_v48, %v3422_v63  ;;  %v1591_v45 = vmul.f32 %v4628_v51, %v3427_v3 }
 0x1b7   : > { %v1696_v14 = vadd.f32 %v1688_v2, %v1605_v41  ;;  %v1508_v36 = vadd.f32 %v1500_v31, %v1476_v15  ;;  %v1567_v9 = vadd.f32 %v1559_v43, %v5234_v49  ;;  %v1592_v62 = vmul.f32 %v4636_v35, %v3456_v21 }
 0x1b8   : > { %v1697_v50 = vadd.f32 %v1689_v44, %v1606_v40  ;;  %v1509_v27 = vadd.f32 %v1501_v20, %v1477_v16  ;;  %v1568_v34 = vadd.f32 %v1560_v12, %v5235_v38  ;;  %v1626_v7 = vmul.f32 %v3439_v13, %v4171_v32 }
 0x1b9   : > { %v1704_v5 = vmax.f32 %v1696_v14, 0.0  ;;  %v1516_v25 = vadd.f32 %v4411_v4, %v1508_v36  ;;  %v1599_v58 = vadd.f32 %v1591_v45, %v1567_v9  ;;  %v1627_v59 = vmul.f32 %v3439_v13, %v4175_v55 }
 0x1ba   : > { %v1705_v41 = vmax.f32 %v1697_v50, 0.0  ;;  %v1517_v52 = vadd.f32 %v4411_v4, %v1509_v27  ;;  %v1600_v11 = vadd.f32 %v1592_v62, %v1568_v34  ;;  %v5236_v47 = vrot.slane %v4175_v55, 7 }
 0x1bb   : > { %v5237_v40 = vrot.slane %v4171_v32, 7  ;;  %v1712_v23 = vmin.f32 %v1704_v5, 6.0  ;;  %v1607_v31 = vadd.f32 %v1599_v58, %v1516_v25  ;;  %v5240_v16 = vrot.slane %v4175_v55, 1 }
 0x1bc   : > { %v5239_v46 = vmov %v5236_v47  ;;  %v1713_v43 = vmin.f32 %v1705_v41, 6.0  ;;  %v1608_v44 = vadd.f32 %v1600_v11, %v1517_v52  ;;  %v5241_v12 = vrot.slane %v4171_v32, 1 }
 0x1bd   : > { %v1639_v30 = vsel %vm852_vm2, %v5237_v40, %v5236_v47  ;;  %v5238_v2 = vmov %v5237_v40  ;;  %v5243_v49 = vmov %v5240_v16  ;;  %v5244_v50 = vrot.slane %v4173_v28, 7 }
 0x1be   : > { %v1643_v15 = vsel %vm852_vm2, %v5239_v46, %v5238_v2  ;;  %v1651_v20 = vmul.f32 %v1639_v30, %v3424_v0  ;;  %v1671_v45 = vsel %vm885_vm3, %v5241_v12, %v5240_v16  ;;  %v5242_v36 = vmov %v5241_v12 }
 0x1bf   : > { %v1650_v6 = vmul.f32 %v1643_v15, %v3451_v18  ;;  %v1675_v9 = vsel %vm885_vm3, %v5243_v49, %v5242_v36  ;;  %v1682_v62 = vmul.f32 %v4458_v53, %v1671_v45  ;;  %v5245_v27 = vrot.slane %v4165_v10, 7 }
 0x1c0   : > { %v1659_v14 = vadd.f32 %v1651_v20, %v1627_v59  ;;  %v1718_v34 = vpack.c.bf16 %v1713_v43, %v1712_v23  ;;  %v1683_v25 = vmul.f32 %v1675_v9, %v3459_v22  ;;  %v5247_v55 = vmov %v5244_v50  ;;  %v5252_v20 = vld [vmem:[#allocation11_spill] sm:$0xff] }
 0x1c1   : > { %v4717_v38 = vsel %vm852_vm2, %v5245_v27, %v5244_v50  ;;  %v1658_v5 = vadd.f32 %v1650_v6, %v1626_v7  ;;  %v5246_v32 = vmov %v5245_v27  ;;  %v1755_v59 = vmul.f32 %v4615_v29, %v5100_v24  ;;  %v5253_v6 = vld [vmem:[#allocation49_spill] sm:$0xff] }
 0x1c2   : > { %v4726_v58 = vsel %vm852_vm2, %v5247_v55, %v5246_v32  ;;  %v1756_v41 = vmul.f32 %v4607_v48, %v5101_v26  ;;  %v5248_v52 = vrot.slane %v4173_v28, 1  ;;  %v5249_v7 = vrot.slane %v4165_v10, 1  ;;  %3148 = vmatprep.mubr.bf16.mxu1 %v1718_v34 }
 0x1c3   : > { %v1690_v29 = vadd.f32 %v1682_v62, %v1658_v5  ;;  %v1691_v2 = vadd.f32 %v1683_v25, %v1659_v14  ;;  %v1787_v48 = vmul.f32 %v4628_v51, %v5115_v61  ;;  %v1788_v46 = vmul.f32 %v4636_v35, %v5116_v1 }
 0x1c4   : > { %v4738_v11 = vsel %vm885_vm3, %v5249_v7, %v5248_v52  ;;  %v5250_v47 = vmov %v5249_v7  ;;  %v5251_v40 = vmov %v5248_v52  ;;  %v1763_v43 = vadd.f32 %v1755_v59, %v5252_v20 }
 0x1c5   : > { %v4746_v23 = vsel %vm885_vm3, %v5251_v40, %v5250_v47  ;;  %v1764_v16 = vadd.f32 %v1756_v41, %v5253_v6  ;;  %v1846_v12 = vmul.f32 %v1643_v15, %v3448_v17  ;;  %v1847_v36 = vmul.f32 %v1639_v30, %v3422_v63 }
 0x1c6   : > { %v1698_v49 = vadd.f32 %v1690_v29, %v1607_v31  ;;  %v1699_v50 = vadd.f32 %v1691_v2, %v1608_v44  ;;  %v1878_v27 = vmul.f32 %v1671_v45, %v3427_v3  ;;  %v1879_v14 = vmul.f32 %v1675_v9, %v3456_v21 }
 0x1c7   : > { %v1795_v62 = vadd.f32 %v1787_v48, %v1763_v43  ;;  %v1796_v34 = vadd.f32 %v1788_v46, %v1764_v16  ;;  %v1854_v51 = vadd.f32 %v1846_v12, %v4195_v60  ;;  %v1855_v35 = vadd.f32 %v1847_v36, %v4215_v37 }
 0x1c8   : > { %v1706_v5 = vmax.f32 %v1698_v49, 0.0  ;;  %v1707_v25 = vmax.f32 %v1699_v50, 0.0  ;;  %v1913_v32 = vmul.f32 %v3439_v13, %v4165_v10  ;;  %v1914_v55 = vmul.f32 %v3439_v13, %v4173_v28 }
 0x1c9   : > { %v1803_v31 = vadd.f32 %v4411_v4, %v1795_v62  ;;  %v1804_v44 = vadd.f32 %v4411_v4, %v1796_v34  ;;  %v1886_v59 = vadd.f32 %v1878_v27, %v1854_v51  ;;  %v1887_v41 = vadd.f32 %v1879_v14, %v1855_v35 }
 0x1ca   : > { %v1714_v52 = vmin.f32 %v1706_v5, 6.0  ;;  %v1715_v7 = vmin.f32 %v1707_v25, 6.0  ;;  %v1937_v60 = vmul.f32 %v4726_v58, %v3451_v18  ;;  %v1938_v37 = vmul.f32 %v4717_v38, %v3424_v0  ;;  %v5262_v5 = vld [vmem:[#allocation18_spill] sm:$0xff] }
 0x1cb   : > { %v1894_v47 = vadd.f32 %v1886_v59, %v1803_v31  ;;  %v1895_v40 = vadd.f32 %v1887_v41, %v1804_v44  ;;  %v1969_v10 = vmul.f32 %v4458_v53, %v4738_v11  ;;  %v1970_v28 = vmul.f32 %v4746_v23, %v3459_v22 }
 0x1cc   : > { %v1719_v29 = vpack.c.bf16 %v1715_v7, %v1714_v52  ;;  %v1945_v2 = vadd.f32 %v1937_v60, %v1913_v32  ;;  %v1946_v48 = vadd.f32 %v1938_v37, %v1914_v55  ;;  %v5254_v46 = vrot.slane %v4368_v42, 7  ;;  %v5263_v32 = vld [vmem:[#allocation19_spill] sm:$0xff] }
 0x1cd   : > { %v5255_v20 = vrot.slane %v4342_v19, 7  ;;  %v1757_v36 = vmul.f32 %v1643_v15, %v5100_v24  ;;  %v1758_v49 = vmul.f32 %v1639_v30, %v5101_v26  ;;  %v5258_v50 = vrot.slane %v4368_v42, 1 }
 0x1ce   : > { %v5257_v16 = vmov %v5254_v46  ;;  %v5259_v27 = vrot.slane %v4342_v19, 1  ;;  %3149 = vmatmul.mubr.bf16.gmra.mrb[20].mxu1 %v1719_v29  ;;  %v1977_v62 = vadd.f32 %v1969_v10, %v1945_v2  ;;  %v1978_v34 = vadd.f32 %v1970_v28, %v1946_v48  ;;  %v5265_v2 = vld [vmem:[#allocation13_spill] sm:$0xff] }
 0x1cf   : > { %v4780_v43 = vsel %vm852_vm2, %v5255_v20, %v5254_v46  ;;  %v5256_v6 = vmov %v5255_v20  ;;  %v5261_v35 = vmov %v5258_v50  ;;  %v1789_v30 = vmul.f32 %v1671_v45, %v5115_v61  ;;  %v5264_v45 = vld [vmem:[#allocation7_spill] sm:$0xff] }
 0x1d0   : > { %v4788_v12 = vsel %vm852_vm2, %v5257_v16, %v5256_v6  ;;  %v4798_v14 = vsel %vm885_vm3, %v5259_v27, %v5258_v50  ;;  %v5260_v51 = vmov %v5259_v27  ;;  %v1765_v25 = vadd.f32 %v1757_v36, %v5262_v5 }
 0x1d1   : > { %v4806_v15 = vsel %vm885_vm3, %v5261_v35, %v5260_v51  ;;  %v1766_v55 = vadd.f32 %v1758_v49, %v5263_v32  ;;  %v1790_v31 = vmul.f32 %v1675_v9, %v5116_v1  ;;  %v1848_v44 = vmul.f32 %v4726_v58, %v3448_v17 }
 0x1d2   : > { %v1985_v59 = vadd.f32 %v1977_v62, %v1894_v47  ;;  %v1986_v41 = vadd.f32 %v1978_v34, %v1895_v40  ;;  %v1849_v52 = vmul.f32 %v4717_v38, %v3422_v63  ;;  %v1880_v7 = vmul.f32 %v4738_v11, %v3427_v3 }
 0x1d3   : > { %v1797_v60 = vadd.f32 %v1789_v30, %v1765_v25  ;;  %v1798_v37 = vadd.f32 %v1790_v31, %v1766_v55  ;;  %v1856_v10 = vadd.f32 %v1848_v44, %v5264_v45  ;;  %v1881_v28 = vmul.f32 %v4746_v23, %v3456_v21  ;;  %v5266_v44 = vld [vmem:[#allocation4_spill] sm:$0xff] }
 0x1d4   : > { %v1993_v29 = vmax.f32 %v1985_v59, 0.0  ;;  %v1994_v9 = vmax.f32 %v1986_v41, 0.0  ;;  %v1857_v48 = vadd.f32 %v1849_v52, %v5265_v2  ;;  %v1915_v47 = vmul.f32 %v3439_v13, %v4342_v19 }
 0x1d5   : > { %v1805_v40 = vadd.f32 %v4411_v4, %v1797_v60  ;;  %v1806_v46 = vadd.f32 %v4411_v4, %v1798_v37  ;;  %v1888_v20 = vadd.f32 %v1880_v7, %v1856_v10  ;;  %v1916_v6 = vmul.f32 %v3439_v13, %v4368_v42  ;;  %v5269_v60 = vld [vmem:[#allocation9_spill] sm:$0xff] }
 0x1d6   : > { %v2001_v16 = vmin.f32 %v1993_v29, 6.0  ;;  %v2002_v36 = vmin.f32 %v1994_v9, 6.0  ;;  %v1889_v49 = vadd.f32 %v1881_v28, %v1857_v48  ;;  %v1939_v50 = vmul.f32 %v4788_v12, %v3451_v18 }
 0x1d7   : > { %v1896_v27 = vadd.f32 %v1888_v20, %v1805_v40  ;;  %v1940_v62 = vmul.f32 %v4780_v43, %v3424_v0  ;;  %v1971_v19 = vmul.f32 %v4458_v53, %v4798_v14  ;;  %v1972_v34 = vmul.f32 %v4806_v15, %v3459_v22 }
 0x1d8   : > { %v2009_v51 = vpack.c.bf16 %v2002_v36, %v2001_v16  ;;  %v1897_v35 = vadd.f32 %v1889_v49, %v1806_v46  ;;  %v1947_v30 = vadd.f32 %v1939_v50, %v1915_v47  ;;  %v1759_v42 = vmul.f32 %v4726_v58, %v5100_v24 }
 0x1d9   : > { %v1948_v5 = vadd.f32 %v1940_v62, %v1916_v6  ;;  %v1760_v25 = vmul.f32 %v4717_v38, %v5101_v26  ;;  %v1791_v32 = vmul.f32 %v4738_v11, %v5115_v61  ;;  %v1792_v55 = vmul.f32 %v4746_v23, %v5116_v1 }
 0x1da   : > { %3152 = vmatprep.mubr.bf16.mxu1 %v2009_v51  ;;  %v1979_v31 = vadd.f32 %v1971_v19, %v1947_v30  ;;  %v1767_v59 = vadd.f32 %v1759_v42, %v5266_v44  ;;  %v5267_v41 = vrot.slane %v4340_v56, 7  ;;  %v5268_v52 = vrot.slane %v4366_v39, 7 }
 0x1db   : > { %v1850_v38 = vmul.f32 %v4788_v12, %v3448_v17  ;;  %v1980_v7 = vadd.f32 %v1972_v34, %v1948_v5  ;;  %v1768_v11 = vadd.f32 %v1760_v25, %v5269_v60  ;;  %v1851_v23 = vmul.f32 %v4780_v43, %v3422_v63 }
 0x1dc   : > { %v1845_v58 = vsel %vm852_vm2, %v5268_v52, %v5267_v41  ;;  %v5270_v37 = vrot.slane %v4366_v39, 1  ;;  %v5271_v45 = vrot.slane %v4340_v56, 1  ;;  %v1987_v28 = vadd.f32 %v1979_v31, %v1896_v27  ;;  %v5274_v27 = vld [vmem:[#allocation10_spill] sm:$0xff] }
 0x1dd   : > { %v1799_v29 = vadd.f32 %v1791_v32, %v1767_v59  ;;  %v1858_v9 = vadd.f32 %v1850_v38, %v4364_v54  ;;  %v1988_v40 = vadd.f32 %v1980_v7, %v1897_v35  ;;  %v1800_v63 = vadd.f32 %v1792_v55, %v1768_v11  ;;  %v5275_v35 = vld [vmem:[#allocation23_spill] sm:$0xff]  ;;  %v5276_v52 = vld [vmem:[#allocation14_spill] sm:$0xff] }
 0x1de   : > { %v1873_v10 = vsel %vm885_vm3, %v5271_v45, %v5270_v37  ;;  %v5272_v2 = vmov %v5271_v45  ;;  %v5273_v48 = vmov %v5270_v37  ;;  %v1859_v46 = vadd.f32 %v1851_v23, %v4398_v8  ;;  %v5277_v7 = vld [vmem:[#allocation27_spill] sm:$0xff]  ;;  %v5278_v37 = vld [vmem:[#allocation17_spill] sm:$0xff] }
 0x1df   : > { %v1877_v47 = vsel %vm885_vm3, %v5273_v48, %v5272_v2  ;;  %v1882_v20 = vmul.f32 %v4798_v14, %v3427_v3  ;;  %v1995_v6 = vmax.f32 %v1987_v28, 0.0  ;;  %v1807_v16 = vadd.f32 %v4411_v4, %v1799_v29  ;;  %v5279_v45 = vld [vmem:[#allocation33_spill] sm:$0xff]  ;;  %v5280_v29 = vld [vmem:[#allocation6_spill] sm:$0xff] }
 0x1e0   : > { %v1883_v54 = vmul.f32 %v4806_v15, %v3456_v21  ;;  %v1941_v56 = vmul.f32 %v1845_v58, %v3451_v18  ;;  %v1996_v36 = vmax.f32 %v1988_v40, 0.0  ;;  %v1808_v39 = vadd.f32 %v4411_v4, %v1800_v63 }
 0x1e1   : > { %v1890_v33 = vadd.f32 %v1882_v20, %v1858_v9  ;;  %v1942_v49 = vmul.f32 %v4394_v57, %v3424_v0  ;;  %v2003_v50 = vmin.f32 %v1995_v6, 6.0  ;;  %v1973_v19 = vmul.f32 %v4458_v53, %v1873_v10 }
 0x1e2   : > { %v1891_v8 = vadd.f32 %v1883_v54, %v1859_v46  ;;  %v1949_v62 = vadd.f32 %v1941_v56, %v5274_v27  ;;  %v2004_v34 = vmin.f32 %v1996_v36, 6.0  ;;  %v1974_v42 = vmul.f32 %v1877_v47, %v3459_v22 }
 0x1e3   : > { %v1898_v51 = vadd.f32 %v1890_v33, %v1807_v16  ;;  %v1950_v30 = vadd.f32 %v1942_v49, %v5275_v35  ;;  %v1761_v32 = vmul.f32 %v4788_v12, %v5100_v24  ;;  %v1762_v57 = vmul.f32 %v4780_v43, %v5101_v26  ;;  %v2986_v49 = vld [vmem:[%s3320_s14 + $0x8] sm:$0xff]  }
 0x1e4   : > { %v1899_v5 = vadd.f32 %v1891_v8, %v1808_v39  ;;  %v1981_v25 = vadd.f32 %v1973_v19, %v1949_v62  ;;  %v2010_v55 = vpack.c.bf16 %v2004_v34, %v2003_v50  ;;  %v1793_v44 = vmul.f32 %v4798_v14, %v5115_v61  ;;  %v2843_v50 = vld [vmem:[%s3320_s14] sm:$0xff]  }
 0x1e5   : > { %v1982_v31 = vadd.f32 %v1974_v42, %v1950_v30  ;;  %v1794_v59 = vmul.f32 %v4806_v15, %v5116_v1  ;;  %v1769_v38 = vadd.f32 %v1761_v32, %v5276_v52  ;;  %v1770_v60 = vadd.f32 %v1762_v57, %v5277_v7  ;;  %v2987_v52 = vld [vmem:[%s3320_s14 + $0x10] sm:$0xff]  }
 0x1e6   : > { %v1989_v41 = vadd.f32 %v1981_v25, %v1898_v51  ;;  %v1852_v11 = vmul.f32 %v1845_v58, %v3448_v17  ;;  %3153 = vmatmul.mubr.bf16.gmra.mrb[24].mxu1 %v2010_v55  ;;  %v1884_v12 = vmul.f32 %v1873_v10, %v3427_v3  ;;  %v1885_v26 = vmul.f32 %v1877_v47, %v3456_v21  ;;  %v5281_v47 = vld [vmem:[#allocation8_spill] sm:$0xff] }
 0x1e7   : > { %v1990_v24 = vadd.f32 %v1982_v31, %v1899_v5  ;;  %v1919_v43 = vmul.f32 0.0, %v3439_v13  ;;  %v1801_v61 = vadd.f32 %v1793_v44, %v1769_v38  ;;  %v1802_v14 = vadd.f32 %v1794_v59, %v1770_v60 }
 0x1e8   : > { %v1997_v23 = vmax.f32 %v1989_v41, 0.0  ;;  %v1860_v1 = vadd.f32 %v1852_v11, %v5278_v37  ;;  %v1893_v28 = vadd.f32 %v1885_v26, %v5279_v45  ;;  %v1943_v9 = vmul.f32 %v5280_v29, %v3451_v18  ;;  %v2988_v41 = vld [vmem:[%s3320_s14 + $0x18] sm:$0xff]  }
 0x1e9   : > { %v1998_v15 = vmax.f32 %v1990_v24, 0.0  ;;  %v1944_v17 = vmul.f32 %v5280_v29, %v3424_v0  ;;  %v1809_v3 = vadd.f32 %v4411_v4, %v1801_v61  ;;  %v1810_v21 = vadd.f32 %v4411_v4, %v1802_v14 }
 0x1ea   : > { %v2005_v58 = vmin.f32 %v1997_v23, 6.0  ;;  %v1892_v13 = vadd.f32 %v1884_v12, %v1860_v1  ;;  %v1951_v2 = vadd.f32 %v1943_v9, %v1919_v43  ;;  %v1975_v40 = vmul.f32 %v4458_v53, %v5281_v47  ;;  %v4912_v53 = vld [vmem:[%s5000_s6] ss:$0 sm:$0xff] }
 0x1eb   : > { %v2006_v10 = vmin.f32 %v1998_v15, 6.0  ;;  %v1952_v48 = vadd.f32 %v1944_v17, %v1919_v43  ;;  %v1901_v46 = vadd.f32 %v1893_v28, %v1810_v21  ;;  %v1976_v18 = vmul.f32 %v5281_v47, %v3459_v22  ;;  %v2990_v17 = vld [vmem:[%s3320_s14 + $0x28] sm:$0xff]  }
 0x1ec   : > { %v1900_v63 = vadd.f32 %v1892_v13, %v1809_v3  ;;  %v1983_v20 = vadd.f32 %v1975_v40, %v1951_v2  ;;  %v2848_v27 = vunpack.c.l.bf16 %v2986_v49  ;;  %v2849_v19 = vunpack.c.h.bf16 %v2986_v49 }
 0x1ed   : > { %v2011_v0 = vpack.c.bf16 %v2006_v10, %v2005_v58  ;;  %v1984_v6 = vadd.f32 %v1976_v18, %v1952_v48  ;;  %v2844_v51 = vunpack.c.l.bf16 %v2843_v50  ;;  %v2845_v30 = vunpack.c.h.bf16 %v2843_v50  ;;  %v2989_v58 = vld [vmem:[%s3320_s14 + $0x20] sm:$0xff]  }
 0x1ee   : > { %v1991_v16 = vadd.f32 %v1983_v20, %v1900_v63  ;;  %v2856_v60 = vunpack.c.l.bf16 %v2988_v41  ;;  %v2857_v24 = vunpack.c.h.bf16 %v2988_v41  ;;  %v2852_v26 = vunpack.c.l.bf16 %v2987_v52 }
 0x1ef   : > { %3156 = vmatprep.mubr.bf16.mxu1 %v2011_v0  ;;  %v1992_v4 = vadd.f32 %v1984_v6, %v1901_v46  ;;  %v2853_v23 = vunpack.c.h.bf16 %v2987_v52  ;;  %v2864_v13 = vunpack.c.l.bf16 %v2990_v17  ;;  %v2865_v2 = vunpack.c.h.bf16 %v2990_v17 }
 0x1f0   : > { %v1999_v54 = vmax.f32 %v1991_v16, 0.0  ;;  %v2860_v47 = vunpack.c.l.bf16 %v2989_v58  ;;  %v2861_v63 = vunpack.c.h.bf16 %v2989_v58 }
 0x1f1   : > { %v2000_v56 = vmax.f32 %v1992_v4, 0.0 }
 0x1f2   : > { %v2007_v36 = vmin.f32 %v1999_v54, 6.0 }
 0x1f3   : > { %v2008_v39 = vmin.f32 %v2000_v56, 6.0 }
 0x1f5   : > { %v2012_v33 = vpack.c.bf16 %v2008_v39, %v2007_v36  ;;  %v2992_v36 = vld [vmem:[%s3320_s14 + $0x38] sm:$0xff]   ;;  %v2991_v39 = vld [vmem:[%s3320_s14 + $0x30] sm:$0xff]  }
 0x1f6   : > { %v2872_v50 = vunpack.c.l.bf16 %v2992_v36 }
 0x1f7   : > { %3157 = vmatmul.mubr.bf16.gmra.mrb[28].mxu1 %v2012_v33 }
 0x217   : > { %v3130_v22 = vpop.f32.mrb[0].mxu1 }
 0x218   : > { %v2127_v8 = vadd.f32 %v3130_v22, %v4912_v53  ;;  %v2118_v62 = vpop.f32.mrb[1].mxu1 }
 0x219   : > { %v2119_v34 = vadd.f32 %v4912_v53, %v2118_v62  ;;  %v3131_v35 = vpop.f32.mrb[2].mxu1  ;;  %v2868_v62 = vunpack.c.l.bf16 %v2991_v39 }
 0x21a   : > { %v2130_v42 = vadd.f32 %v3131_v35, %v4912_v53  ;;  %v2121_v5 = vpop.f32.mrb[3].mxu1  ;;  %v2314_v32 = vadd.f32 %v2848_v27, %v2127_v8  ;;  %v2873_v8 = vunpack.c.h.bf16 %v2992_v36 }
 0x21b   : > { %v2122_v25 = vadd.f32 %v4912_v53, %v2121_v5  ;;  %v2312_v55 = vadd.f32 %v2844_v51, %v2119_v34  ;;  %v2869_v34 = vunpack.c.h.bf16 %v2991_v39 }
 0x21c   : > { %v2315_v57 = vadd.f32 %v2849_v19, %v2130_v42 }
 0x21d   : > { %v2313_v31 = vadd.f32 %v2845_v30, %v2122_v25 }
 0x21e   : > { %v2914_v44 = vpack.c.bf16 %v2315_v57, %v2314_v32 }
 0x21f   : > { %v2909_v59 = vpack.c.bf16 %v2313_v31, %v2312_v55  ;;  %v2994_v31 = vld [vmem:[%s3320_s14 + $0x48] sm:$0xff]  }
 0x220   : > { %3001 = vst [vmem:[%s4925_s29 + $0x8] sm:$0xff] %v2914_v44   ;;  %v2993_v44 = vld [vmem:[%s3320_s14 + $0x40] sm:$0xff]   ;;  %v2880_v52 = vunpack.c.l.bf16 %v2994_v31 }
 0x221   : > { %2910 = vst [vmem:[%s4925_s29] sm:$0xff] %v2909_v59  }
 0x233   : > { %v3134_v38 = vpop.f32.mrb[4].mxu1 }
 0x234   : > { %v2143_v7 = vadd.f32 %v3134_v38, %v4912_v53  ;;  %v2134_v11 = vpop.f32.mrb[5].mxu1 }
 0x235   : > { %v2135_v12 = vadd.f32 %v4912_v53, %v2134_v11  ;;  %v3135_v43 = vpop.f32.mrb[6].mxu1  ;;  %v2876_v11 = vunpack.c.l.bf16 %v2993_v44 }
 0x236   : > { %v2146_v61 = vadd.f32 %v3135_v43, %v4912_v53  ;;  %v2137_v14 = vpop.f32.mrb[7].mxu1  ;;  %v2318_v1 = vadd.f32 %v2856_v60, %v2143_v7  ;;  %v2881_v7 = vunpack.c.h.bf16 %v2994_v31 }
 0x237   : > { %v2138_v37 = vadd.f32 %v4912_v53, %v2137_v14  ;;  %v2316_v45 = vadd.f32 %v2852_v26, %v2135_v12  ;;  %v2877_v12 = vunpack.c.h.bf16 %v2993_v44 }
 0x238   : > { %v2319_v15 = vadd.f32 %v2857_v24, %v2146_v61 }
 0x239   : > { %v2317_v28 = vadd.f32 %v2853_v23, %v2138_v37 }
 0x23a   : > { %v2924_v29 = vpack.c.bf16 %v2319_v15, %v2318_v1 }
 0x23b   : > { %v2919_v9 = vpack.c.bf16 %v2317_v28, %v2316_v45  ;;  %v2996_v28 = vld [vmem:[%s3320_s14 + $0x58] sm:$0xff]  }
 0x23c   : > { %3003 = vst [vmem:[%s4925_s29 + $0x18] sm:$0xff] %v2924_v29   ;;  %v2995_v29 = vld [vmem:[%s3320_s14 + $0x50] sm:$0xff]   ;;  %v2888_v58 = vunpack.c.l.bf16 %v2996_v28 }
 0x23d   : > { %3002 = vst [vmem:[%s4925_s29 + $0x10] sm:$0xff] %v2919_v9  }
 0x250   : > { %v3138_v3 = vpop.f32.mrb[8].mxu1 }
 0x251   : > { %v2159_v21 = vadd.f32 %v3138_v3, %v4912_v53  ;;  %v2150_v10 = vpop.f32.mrb[9].mxu1 }
 0x252   : > { %v2151_v48 = vadd.f32 %v4912_v53, %v2150_v10  ;;  %v3139_v40 = vpop.f32.mrb[10].mxu1  ;;  %v2884_v10 = vunpack.c.l.bf16 %v2995_v29 }
 0x253   : > { %v2162_v46 = vadd.f32 %v3139_v40, %v4912_v53  ;;  %v2153_v18 = vpop.f32.mrb[11].mxu1  ;;  %v2322_v20 = vadd.f32 %v2864_v13, %v2159_v21  ;;  %v2889_v21 = vunpack.c.h.bf16 %v2996_v28 }
 0x254   : > { %v2154_v0 = vadd.f32 %v4912_v53, %v2153_v18  ;;  %v2320_v16 = vadd.f32 %v2860_v47, %v2151_v48  ;;  %v2885_v48 = vunpack.c.h.bf16 %v2995_v29 }
 0x255   : > { %v2323_v6 = vadd.f32 %v2865_v2, %v2162_v46 }
 0x256   : > { %v2321_v4 = vadd.f32 %v2861_v63, %v2154_v0 }
 0x257   : > { %v2934_v54 = vpack.c.bf16 %v2323_v6, %v2322_v20 }
 0x258   : > { %v2929_v56 = vpack.c.bf16 %v2321_v4, %v2320_v16  ;;  %v2998_v4 = vld [vmem:[%s3320_s14 + $0x68] sm:$0xff]  }
 0x259   : > { %3005 = vst [vmem:[%s4925_s29 + $0x28] sm:$0xff] %v2934_v54   ;;  %v2997_v54 = vld [vmem:[%s3320_s14 + $0x60] sm:$0xff]   ;;  %v2896_v39 = vunpack.c.l.bf16 %v2998_v4 }
 0x25a   : > { %3004 = vst [vmem:[%s4925_s29 + $0x20] sm:$0xff] %v2929_v56  }
 0x270   : > { %v3142_v33 = vpop.f32.mrb[12].mxu1 }
 0x271   : > { %v2175_v49 = vadd.f32 %v3142_v33, %v4912_v53  ;;  %v2166_v22 = vpop.f32.mrb[13].mxu1 }
 0x272   : > { %v2167_v27 = vadd.f32 %v4912_v53, %v2166_v22  ;;  %v3143_v19 = vpop.f32.mrb[14].mxu1  ;;  %v2892_v22 = vunpack.c.l.bf16 %v2997_v54 }
 0x273   : > { %v2178_v51 = vadd.f32 %v3143_v19, %v4912_v53  ;;  %v2169_v35 = vpop.f32.mrb[15].mxu1  ;;  %v2326_v42 = vadd.f32 %v2872_v50, %v2175_v49  ;;  %v2897_v49 = vunpack.c.h.bf16 %v2998_v4 }
 0x274   : > { %v2170_v30 = vadd.f32 %v4912_v53, %v2169_v35  ;;  %v2324_v25 = vadd.f32 %v2868_v62, %v2167_v27  ;;  %v2893_v27 = vunpack.c.h.bf16 %v2997_v54 }
 0x275   : > { %v2327_v5 = vadd.f32 %v2873_v8, %v2178_v51 }
 0x276   : > { %v2325_v32 = vadd.f32 %v2869_v34, %v2170_v30 }
 0x277   : > { %v2944_v57 = vpack.c.bf16 %v2327_v5, %v2326_v42 }
 0x278   : > { %v2939_v55 = vpack.c.bf16 %v2325_v32, %v2324_v25  ;;  %v3000_v32 = vld [vmem:[%s3320_s14 + $0x78] sm:$0xff]  }
 0x279   : > { %3007 = vst [vmem:[%s4925_s29 + $0x38] sm:$0xff] %v2944_v57   ;;  %v2999_v57 = vld [vmem:[%s3320_s14 + $0x70] sm:$0xff]   ;;  %v2904_v44 = vunpack.c.l.bf16 %v3000_v32 }
 0x27a   : > { %3006 = vst [vmem:[%s4925_s29 + $0x30] sm:$0xff] %v2939_v55  }
 0x289   : > { %v3146_v59 = vpop.f32.mrb[16].mxu1 }
 0x28a   : > { %v2191_v41 = vadd.f32 %v3146_v59, %v4912_v53  ;;  %v2182_v38 = vpop.f32.mrb[17].mxu1 }
 0x28b   : > { %v2183_v60 = vadd.f32 %v4912_v53, %v2182_v38  ;;  %v3147_v24 = vpop.f32.mrb[18].mxu1  ;;  %v2900_v38 = vunpack.c.l.bf16 %v2999_v57 }
 0x28c   : > { %v2194_v26 = vadd.f32 %v3147_v24, %v4912_v53  ;;  %v2185_v43 = vpop.f32.mrb[19].mxu1  ;;  %v2330_v61 = vadd.f32 %v2880_v52, %v2191_v41  ;;  %v2905_v41 = vunpack.c.h.bf16 %v3000_v32 }
 0x28d   : > { %v2186_v23 = vadd.f32 %v4912_v53, %v2185_v43  ;;  %v2328_v37 = vadd.f32 %v2876_v11, %v2183_v60  ;;  %v2901_v60 = vunpack.c.h.bf16 %v2999_v57 }
 0x28e   : > { %v2331_v14 = vadd.f32 %v2881_v7, %v2194_v26 }
 0x28f   : > { %v2329_v1 = vadd.f32 %v2877_v12, %v2186_v23 }
 0x290   : > { %v2954_v15 = vpack.c.bf16 %v2331_v14, %v2330_v61 }
 0x291   : > { %v2949_v45 = vpack.c.bf16 %v2329_v1, %v2328_v37 }
 0x292   : > { %3009 = vst [vmem:[%s4925_s29 + $0x48] sm:$0xff] %v2954_v15  }
 0x293   : > { %3008 = vst [vmem:[%s4925_s29 + $0x40] sm:$0xff] %v2949_v45  }
 0x2a1   : > { %v3150_v9 = vpop.f32.mrb[20].mxu1 }
 0x2a2   : > { %v2207_v17 = vadd.f32 %v3150_v9, %v4912_v53  ;;  %v2198_v3 = vpop.f32.mrb[21].mxu1 }
 0x2a3   : > { %v2199_v13 = vadd.f32 %v4912_v53, %v2198_v3  ;;  %v3151_v2 = vpop.f32.mrb[22].mxu1 }
 0x2a4   : > { %v2210_v47 = vadd.f32 %v3151_v2, %v4912_v53  ;;  %v2201_v40 = vpop.f32.mrb[23].mxu1  ;;  %v2334_v46 = vadd.f32 %v2888_v58, %v2207_v17 }
 0x2a5   : > { %v2202_v63 = vadd.f32 %v4912_v53, %v2201_v40  ;;  %v2332_v0 = vadd.f32 %v2884_v10, %v2199_v13 }
 0x2a6   : > { %v2335_v18 = vadd.f32 %v2889_v21, %v2210_v47 }
 0x2a7   : > { %v2333_v20 = vadd.f32 %v2885_v48, %v2202_v63 }
 0x2a8   : > { %v2964_v6 = vpack.c.bf16 %v2335_v18, %v2334_v46 }
 0x2a9   : > { %v2959_v16 = vpack.c.bf16 %v2333_v20, %v2332_v0 }
 0x2aa   : > { %3011 = vst [vmem:[%s4925_s29 + $0x58] sm:$0xff] %v2964_v6  }
 0x2ab   : > { %3010 = vst [vmem:[%s4925_s29 + $0x50] sm:$0xff] %v2959_v16  }
 0x2b9   : > { %v3154_v56 = vpop.f32.mrb[24].mxu1 }
 0x2ba   : > { %v2223_v36 = vadd.f32 %v3154_v56, %v4912_v53  ;;  %v2214_v33 = vpop.f32.mrb[25].mxu1 }
 0x2bb   : > { %v2215_v50 = vadd.f32 %v4912_v53, %v2214_v33  ;;  %v3155_v8 = vpop.f32.mrb[26].mxu1 }
 0x2bc   : > { %v2226_v62 = vadd.f32 %v3155_v8, %v4912_v53  ;;  %v2217_v19 = vpop.f32.mrb[27].mxu1  ;;  %v2338_v51 = vadd.f32 %v2896_v39, %v2223_v36 }
 0x2bd   : > { %v2218_v34 = vadd.f32 %v4912_v53, %v2217_v19  ;;  %v2336_v30 = vadd.f32 %v2892_v22, %v2215_v50 }
 0x2be   : > { %v2339_v35 = vadd.f32 %v2897_v49, %v2226_v62 }
 0x2bf   : > { %v2337_v42 = vadd.f32 %v2893_v27, %v2218_v34 }
 0x2c0   : > { %v2974_v5 = vpack.c.bf16 %v2339_v35, %v2338_v51 }
 0x2c1   : > { %v2969_v25 = vpack.c.bf16 %v2337_v42, %v2336_v30 }
 0x2c2   : > { %3013 = vst [vmem:[%s4925_s29 + $0x68] sm:$0xff] %v2974_v5  }
 0x2c3   : > { %3012 = vst [vmem:[%s4925_s29 + $0x60] sm:$0xff] %v2969_v25  }
 0x2ca   : > { %v3158_v55 = vpop.f32.mrb[28].mxu1 }
 0x2cb   : > { %v2239_v31 = vadd.f32 %v3158_v55, %v4912_v53  ;;  %v2230_v59 = vpop.f32.mrb[29].mxu1 }
 0x2cc   : > { %v2231_v52 = vadd.f32 %v4912_v53, %v2230_v59  ;;  %v3159_v7 = vpop.f32.mrb[30].mxu1 }
 0x2cd   : > { %v2242_v11 = vadd.f32 %v3159_v7, %v4912_v53  ;;  %v2233_v24 = vpop.f32.mrb[31].mxu1  ;;  %v2342_v26 = vadd.f32 %v2904_v44, %v2239_v31 }
 0x2ce   : > { %v2234_v12 = vadd.f32 %v4912_v53, %v2233_v24  ;;  %v2340_v23 = vadd.f32 %v2900_v38, %v2231_v52 }
 0x2cf   : > { %v2343_v43 = vadd.f32 %v2905_v41, %v2242_v11 }
 0x2d0   : > { %v2341_v61 = vadd.f32 %v2901_v60, %v2234_v12 }
 0x2d1   : > { %v2984_v14 = vpack.c.bf16 %v2343_v43, %v2342_v26 }
 0x2d2   : > { %v2979_v37 = vpack.c.bf16 %v2341_v61, %v2340_v23 }
 0x2d3   : > { %3015 = vst [vmem:[%s4925_s29 + $0x78] sm:$0xff] %v2984_v14  }
 0x2d4   : > { %3014 = vst [vmem:[%s4925_s29 + $0x70] sm:$0xff] %v2979_v37  }
 0x2d5 PF: > { %s17_s26 = sadd.s32 1, %s3242_s26   ;;  %s5282_s24 = smov %s3238_s25 }
 0x2d6   : > { %p14_p5 = scmp.ge.s32.totalorder %s17_s26, 4   ;;  %s5283_s25 = smov %s5285_s27 }
 0x2d8   :  { %16 = sbr.rel (!%p14_p5) target bundleno = 2 (0x2), region = 93 }

</bundles_post_ra>
